<compile_context>
chip_gen: v5e
topology: v5e:2x2
jax: 0.10.0
libtpu: 0.0.40
codegen_flags: <defaults>
</compile_context>

<pallas_src>
import functools

import jax
import jax.numpy as jnp
from jax.experimental import pallas as pl
from jax.experimental.pallas import tpu as pltpu


def _round_up(x: int, m: int) -> int:
    return ((x + m - 1) // m) * m


_BUFFERED = getattr(pl, "Buffered", None)


def _const_spec(shape):
    """Full-extent block, constant index_map, single pipeline buffer."""
    zeros = (0,) * len(shape)
    idx = lambda i, _z=zeros: _z
    if _BUFFERED is not None:
        try:
            # Block index never changes -> second pipeline buffer is pure waste.
            return pl.BlockSpec(shape, idx, pipeline_mode=_BUFFERED(1))
        except TypeError:
            pass
    return pl.BlockSpec(shape, idx)


def _mrc_kernel(x_ref, w1_ref, b1_ref, w2_ref, b2_ref, g_ref, be_ref,
                w3_ref, b3_ref, out_ref, *, eps, inter):
    """One tile of T tokens; computes both (start, end) branches.

    Shapes (per tile):
      x_ref  : (T, H)      bf16
      w1_ref : (H, 2I)     bf16   [start | end] up-projection, fused
      b1_ref : (1, 2I)     f32
      w2_ref : (2, I, H)   bf16   down-projections
      b2_ref : (2, 1, H)   f32
      g_ref  : (2, 1, H)   f32    LayerNorm gamma
      be_ref : (2, 1, H)   f32    LayerNorm beta
      w3_ref : (2, H, Cp)  bf16   class heads packed into disjoint lanes
      b3_ref : (1, Cp)     f32    packed class biases
      out_ref: (T, Cp)     f32    packed logits (start lanes 0..C-1, end C..2C-1)
    """
    x_bf = x_ref[...]                                   # (T, H) bf16
    x_f32 = x_bf.astype(jnp.float32)

    # Fused up-projection for both branches: one bf16 MXU matmul, f32 accum.
    h = jnp.dot(x_bf, w1_ref[...], preferred_element_type=jnp.float32)
    h = jax.nn.gelu(h + b1_ref[...], approximate=True).astype(jnp.bfloat16)

    logits = None
    for br in range(2):                                 # 0 = start, 1 = end
        h_br = h[:, br * inter:(br + 1) * inter]        # (T, I) bf16, static slice
        y = jnp.dot(h_br, w2_ref[br], preferred_element_type=jnp.float32)
        y = y + b2_ref[br] + x_f32                      # residual in f32
        # LayerNorm (affine, biased variance, like torch)
        mu = jnp.mean(y, axis=-1, keepdims=True)
        var = jnp.mean(jnp.square(y - mu), axis=-1, keepdims=True)
        y = (y - mu) * jax.lax.rsqrt(var + eps)
        y = y * g_ref[br] + be_ref[br]
        # Class projection into its disjoint lane slot of the packed slab.
        l_br = jnp.dot(y.astype(jnp.bfloat16), w3_ref[br],
                       preferred_element_type=jnp.float32)
        logits = l_br if logits is None else logits + l_br
    out_ref[...] = (logits + b3_ref[...]).astype(out_ref.dtype)


def prepare_mrc_params(w1, b1, w2, b2, gamma, beta, w3, b3, *, num_class=2):
    """One-time weight preprocessing (hoisted out of the hot forward path).

    Inputs use a leading axis of 2 stacking the independent start/end branch
    parameters: w1 (2,H,I), b1 (2,1,I), w2 (2,I,H), b2 (2,1,H),
    gamma/beta (2,1,H), w3 (2,H,C), b3 (2,1,C).
    """
    C = num_class
    H, I = w1.shape[1], w1.shape[2]
    Cp = _round_up(max(2 * C, 1), 128)                  # lane-dense packed width

    w1cat = jnp.concatenate([w1[0], w1[1]], axis=-1).astype(jnp.bfloat16)  # (H, 2I)
    b1cat = jnp.concatenate([b1[0], b1[1]], axis=-1).astype(jnp.float32)   # (1, 2I)
    w2b = w2.astype(jnp.bfloat16)
    b2f = b2.astype(jnp.float32)
    gf = gamma.astype(jnp.float32)
    bef = beta.astype(jnp.float32)

    # Pack both class heads into one Cp-wide slab: start -> lanes [0, C),
    # end -> lanes [C, 2C).  Zero lanes are sliced away in the wrapper.
    w3p = jnp.zeros((2, H, Cp), jnp.float32)
    w3p = w3p.at[0, :, :C].set(w3[0].astype(jnp.float32))
    w3p = w3p.at[1, :, C:2 * C].set(w3[1].astype(jnp.float32))
    w3p = w3p.astype(jnp.bfloat16)
    b3pack = jnp.zeros((1, Cp), jnp.float32)
    b3pack = b3pack.at[0, :C].set(b3[0, 0].astype(jnp.float32))
    b3pack = b3pack.at[0, C:2 * C].set(b3[1, 0].astype(jnp.float32))

    return (w1cat, b1cat, w2b, b2f, gf, bef, w3p, b3pack)


def mrc_forward(x, params, *, num_class=2, eps=1e-5, tokens_per_step=128):
    """Pallas equivalent of MRC.forward.

    Args:
      x:      (B, S, H) hidden states (any float dtype; cast to bf16).
      params: output of prepare_mrc_params().
    Returns:
      (start_logits, end_logits), each (B, S, num_class) float32.
    """
    (w1cat, b1cat, w2, b2, gamma, beta, w3p, b3pack) = params
    B, S, H = x.shape
    two_I = w1cat.shape[1]
    I = two_I // 2
    Cp = w3p.shape[-1]
    N = B * S

    T = min(tokens_per_step, _round_up(N, 8))           # sublane-dense token tile
    # Give the second TensorCore (v7x megacore) work even on small inputs.
    if _round_up(N, T) // T < 2 and T >= 16:
        T = _round_up(T // 2, 8)
    N_pad = _round_up(N, T)

    x_flat = x.reshape(N, H).astype(jnp.bfloat16)
    if N_pad != N:
        x_flat = jnp.pad(x_flat, ((0, N_pad - N), (0, 0)))

    grid = (N_pad // T,)
    kernel = functools.partial(_mrc_kernel, eps=eps, inter=I)

    weight_bytes = 2 * (H * two_I + 2 * I * H + 2 * H * Cp)       # bf16 weights
    bias_bytes = 4 * (two_I + 3 * 2 * H + Cp)
    cost = pl.CostEstimate(
        flops=2 * N_pad * (H * two_I + 2 * I * H + 2 * H * Cp),
        transcendentals=N_pad * two_I,                            # tanh in gelu
        bytes_accessed=N_pad * H * 2 + N_pad * Cp * 4 + weight_bytes + bias_bytes,
    )

    out = pl.pallas_call(
        kernel,
        out_shape=jax.ShapeDtypeStruct((N_pad, Cp), jnp.float32),
        grid=grid,
        in_specs=[
            pl.BlockSpec((T, H), lambda i: (i, 0)),   # token tile
            _const_spec((H, two_I)),                  # w1cat (VMEM-resident)
            _const_spec((1, two_I)),                  # b1cat
            _const_spec((2, I, H)),                   # w2
            _const_spec((2, 1, H)),                   # b2
            _const_spec((2, 1, H)),                   # gamma
            _const_spec((2, 1, H)),                   # beta
            _const_spec((2, H, Cp)),                  # w3 packed heads
            _const_spec((1, Cp)),                     # b3 packed
        ],
        out_specs=pl.BlockSpec((T, Cp), lambda i: (i, 0)),
        compiler_params=pltpu.CompilerParams(
            dimension_semantics=("parallel",),        # independent token tiles
            vmem_limit_bytes=48 * 1024 * 1024,        # above v5e's 16 MiB default
        ),
        cost_estimate=cost,
    )(x_flat, w1cat, b1cat, w2, b2, gamma, beta, w3p, b3pack)

    logits = out[:N]
    start = logits[:, :num_class].reshape(B, S, num_class)
    end = logits[:, num_class:2 * num_class].reshape(B, S, num_class)
    return start, end


if __name__ == "__main__":
    # Small config consistent with the module: hidden=128, intermediate=1024
    # (FeedForward(1024)), num_class=2, batch=2, seq=8.
    B, S, H = 2, 8, 128
    I = 1024
    C = 2
    EPS = 1e-5

    key = jax.random.PRNGKey(0)
    ks = jax.random.split(key, 10)

    def mk(k, shape, scale=0.02):
        return scale * jax.random.normal(k, shape, dtype=jnp.float32)

    x = jax.random.normal(ks[0], (B, S, H), dtype=jnp.float32)
    # Leading axis 2 stacks the independent start / end branch parameters.
    w1 = mk(ks[1], (2, H, I))
    b1 = mk(ks[2], (2, 1, I))
    w2 = mk(ks[3], (2, I, H))
    b2 = mk(ks[4], (2, 1, H))
    gamma = 1.0 + mk(ks[5], (2, 1, H))
    beta = mk(ks[6], (2, 1, H))
    w3 = mk(ks[7], (2, H, C))
    b3 = mk(ks[8], (2, 1, C))

    params = prepare_mrc_params(w1, b1, w2, b2, gamma, beta, w3, b3, num_class=C)
    params = jax.block_until_ready(params)

    start_logits, end_logits = mrc_forward(x, params, num_class=C, eps=EPS)
    (start_logits, end_logits) = jax.block_until_ready((start_logits, end_logits))

    # Pure-JAX reference mirroring the kernel's bf16-operand / f32-accumulate
    # numerics (residual and LayerNorm stats in f32).
    def ref_branch(xb, xf, W1, B1, W2, B2, G, Be, W3, B3):
        bf = jnp.bfloat16
        h = jnp.dot(xb, W1.astype(bf), preferred_element_type=jnp.float32) + B1
        h = jax.nn.gelu(h, approximate=True).astype(bf)
        y = jnp.dot(h, W2.astype(bf), preferred_element_type=jnp.float32) + B2 + xf
        mu = y.mean(-1, keepdims=True)
        var = jnp.square(y - mu).mean(-1, keepdims=True)
        y = (y - mu) * jax.lax.rsqrt(var + EPS) * G + Be
        return (jnp.dot(y.astype(bf), W3.astype(bf),
                        preferred_element_type=jnp.float32) + B3)

    xb = x.reshape(B * S, H).astype(jnp.bfloat16)
    xf = xb.astype(jnp.float32)
    ref_start = ref_branch(xb, xf, w1[0], b1[0], w2[0], b2[0],
                           gamma[0], beta[0], w3[0], b3[0]).reshape(B, S, C)
    ref_end = ref_branch(xb, xf, w1[1], b1[1], w2[1], b2[1],
                         gamma[1], beta[1], w3[1], b3[1]).reshape(B, S, C)

    assert start_logits.shape == (B, S, C) and end_logits.shape == (B, S, C)
    assert jnp.allclose(start_logits, ref_start, atol=2e-2, rtol=2e-2), \
        "start_logits mismatch"
    assert jnp.allclose(end_logits, ref_end, atol=2e-2, rtol=2e-2), \
        "end_logits mismatch"

    print("KERNEL_OK")
</pallas_src>

<mosaic_0001>
module attributes {stable_mosaic.version = 11 : i64} {
  func.func @_mrc_kernel(%arg0: i32, %arg1: memref<8x128xbf16, #tpu.memory_space<vmem>>, %arg2: memref<128x2048xbf16, #tpu.memory_space<vmem>>, %arg3: memref<1x2048xf32, #tpu.memory_space<vmem>>, %arg4: memref<2x1024x128xbf16, #tpu.memory_space<vmem>>, %arg5: memref<2x1x128xf32, #tpu.memory_space<vmem>>, %arg6: memref<2x1x128xf32, #tpu.memory_space<vmem>>, %arg7: memref<2x1x128xf32, #tpu.memory_space<vmem>>, %arg8: memref<2x128x128xbf16, #tpu.memory_space<vmem>>, %arg9: memref<1x128xf32, #tpu.memory_space<vmem>>, %arg10: memref<8x128xf32, #tpu.memory_space<vmem>>) attributes {dimension_semantics = [#tpu.dimension_semantics<parallel>], iteration_bounds = array<i64: 2>, scalar_prefetch = 0 : i64, scratch_operands = 0 : i64, tpu.core_type = #tpu.core_type<tc>, window_params = [{transform_indices = @transform_0, window_bounds = array<i64: 8, 128>}, {pipeline_mode = #tpu.pipeline_mode<synchronous>, transform_indices = @transform_1, window_bounds = array<i64: 128, 2048>}, {pipeline_mode = #tpu.pipeline_mode<synchronous>, transform_indices = @transform_2, window_bounds = array<i64: 1, 2048>}, {pipeline_mode = #tpu.pipeline_mode<synchronous>, transform_indices = @transform_3, window_bounds = array<i64: 2, 1024, 128>}, {pipeline_mode = #tpu.pipeline_mode<synchronous>, transform_indices = @transform_4, window_bounds = array<i64: 2, 1, 128>}, {pipeline_mode = #tpu.pipeline_mode<synchronous>, transform_indices = @transform_5, window_bounds = array<i64: 2, 1, 128>}, {pipeline_mode = #tpu.pipeline_mode<synchronous>, transform_indices = @transform_6, window_bounds = array<i64: 2, 1, 128>}, {pipeline_mode = #tpu.pipeline_mode<synchronous>, transform_indices = @transform_7, window_bounds = array<i64: 2, 128, 128>}, {pipeline_mode = #tpu.pipeline_mode<synchronous>, transform_indices = @transform_8, window_bounds = array<i64: 1, 128>}, {transform_indices = @transform_9, window_bounds = array<i64: 8, 128>}]} {
    %c0 = arith.constant 0 : index
    %c0_0 = arith.constant 0 : index
    %0 = vector.load %arg1[%c0, %c0_0] : memref<8x128xbf16, #tpu.memory_space<vmem>>, vector<8x128xbf16>
    %1 = arith.extf %0 : vector<8x128xbf16> to vector<8x128xf32>
    %c0_1 = arith.constant 0 : index
    %c0_2 = arith.constant 0 : index
    %2 = vector.load %arg2[%c0_1, %c0_2] : memref<128x2048xbf16, #tpu.memory_space<vmem>>, vector<128x2048xbf16>
    %cst = arith.constant dense<0.000000e+00> : vector<8x2048xf32>
    %3 = tpu.matmul %0, %2, %cst {dimension_numbers = #tpu.dot_dimension_numbers<[1], [0], [0], [1], [0, 0, 1, 1], [], []>} : vector<8x128xbf16>, vector<128x2048xbf16>, vector<8x2048xf32> -> vector<8x2048xf32>
    %c0_3 = arith.constant 0 : index
    %c0_4 = arith.constant 0 : index
    %4 = vector.load %arg3[%c0_3, %c0_4] : memref<1x2048xf32, #tpu.memory_space<vmem>>, vector<1x2048xf32>
    %5 = vector.broadcast %4 : vector<1x2048xf32> to vector<8x2048xf32>
    %6 = arith.addf %3, %5 : vector<8x2048xf32>
    %7 = arith.mulf %6, %6 : vector<8x2048xf32>
    %8 = arith.mulf %6, %7 : vector<8x2048xf32>
    %cst_5 = arith.constant 4.471500e-02 : f32
    %9 = vector.broadcast %cst_5 : f32 to vector<8x2048xf32>
    %10 = arith.mulf %9, %8 : vector<8x2048xf32>
    %11 = arith.addf %6, %10 : vector<8x2048xf32>
    %cst_6 = arith.constant 0.797884583 : f32
    %12 = vector.broadcast %cst_6 : f32 to vector<8x2048xf32>
    %13 = arith.mulf %12, %11 : vector<8x2048xf32>
    %14 = math.tanh %13 : vector<8x2048xf32>
    %cst_7 = arith.constant 1.000000e+00 : f32
    %15 = vector.broadcast %cst_7 : f32 to vector<8x2048xf32>
    %16 = arith.addf %15, %14 : vector<8x2048xf32>
    %cst_8 = arith.constant 5.000000e-01 : f32
    %17 = vector.broadcast %cst_8 : f32 to vector<8x2048xf32>
    %18 = arith.mulf %17, %16 : vector<8x2048xf32>
    %19 = arith.mulf %6, %18 : vector<8x2048xf32>
    %20 = arith.truncf %19 : vector<8x2048xf32> to vector<8x2048xbf16>
    %21 = vector.extract_strided_slice %20 {offsets = [0, 0], sizes = [8, 1024], strides = [1, 1]} : vector<8x2048xbf16> to vector<8x1024xbf16>
    %c0_9 = arith.constant 0 : index
    %c0_10 = arith.constant 0 : index
    %c0_11 = arith.constant 0 : index
    %22 = vector.load %arg4[%c0_9, %c0_10, %c0_11] : memref<2x1024x128xbf16, #tpu.memory_space<vmem>>, vector<1x1024x128xbf16>
    %23 = vector.shape_cast %22 : vector<1x1024x128xbf16> to vector<1024x128xbf16>
    %cst_12 = arith.constant dense<0.000000e+00> : vector<8x128xf32>
    %24 = tpu.matmul %21, %23, %cst_12 {dimension_numbers = #tpu.dot_dimension_numbers<[1], [0], [0], [1], [0, 0, 1, 1], [], []>} : vector<8x1024xbf16>, vector<1024x128xbf16>, vector<8x128xf32> -> vector<8x128xf32>
    %c0_13 = arith.constant 0 : index
    %c0_14 = arith.constant 0 : index
    %c0_15 = arith.constant 0 : index
    %25 = vector.load %arg5[%c0_13, %c0_14, %c0_15] : memref<2x1x128xf32, #tpu.memory_space<vmem>>, vector<1x1x128xf32>
    %26 = vector.shape_cast %25 : vector<1x1x128xf32> to vector<1x128xf32>
    %27 = vector.broadcast %26 : vector<1x128xf32> to vector<8x128xf32>
    %28 = arith.addf %24, %27 : vector<8x128xf32>
    %29 = arith.addf %28, %1 : vector<8x128xf32>
    %cst_16 = arith.constant dense<0.000000e+00> : vector<8xf32>
    %30 = vector.multi_reduction <add>, %29, %cst_16 [1] : vector<8x128xf32> to vector<8xf32>
    %31 = vector.shape_cast %30 : vector<8xf32> to vector<8x1xf32>
    %cst_17 = arith.constant 1.280000e+02 : f32
    %32 = vector.broadcast %cst_17 : f32 to vector<8x1xf32>
    %33 = arith.divf %31, %32 : vector<8x1xf32>
    %34 = vector.broadcast %33 : vector<8x1xf32> to vector<8x128xf32>
    %35 = arith.subf %29, %34 : vector<8x128xf32>
    %36 = arith.mulf %35, %35 : vector<8x128xf32>
    %cst_18 = arith.constant dense<0.000000e+00> : vector<8xf32>
    %37 = vector.multi_reduction <add>, %36, %cst_18 [1] : vector<8x128xf32> to vector<8xf32>
    %38 = vector.shape_cast %37 : vector<8xf32> to vector<8x1xf32>
    %cst_19 = arith.constant 1.280000e+02 : f32
    %39 = vector.broadcast %cst_19 : f32 to vector<8x1xf32>
    %40 = arith.divf %38, %39 : vector<8x1xf32>
    %41 = vector.broadcast %33 : vector<8x1xf32> to vector<8x128xf32>
    %42 = arith.subf %29, %41 : vector<8x128xf32>
    %cst_20 = arith.constant 9.99999974E-6 : f32
    %43 = vector.broadcast %cst_20 : f32 to vector<8x1xf32>
    %44 = arith.addf %40, %43 : vector<8x1xf32>
    %45 = math.rsqrt %44 : vector<8x1xf32>
    %46 = vector.broadcast %45 : vector<8x1xf32> to vector<8x128xf32>
    %47 = arith.mulf %42, %46 : vector<8x128xf32>
    %c0_21 = arith.constant 0 : index
    %c0_22 = arith.constant 0 : index
    %c0_23 = arith.constant 0 : index
    %48 = vector.load %arg6[%c0_21, %c0_22, %c0_23] : memref<2x1x128xf32, #tpu.memory_space<vmem>>, vector<1x1x128xf32>
    %49 = vector.shape_cast %48 : vector<1x1x128xf32> to vector<1x128xf32>
    %50 = vector.broadcast %49 : vector<1x128xf32> to vector<8x128xf32>
    %51 = arith.mulf %47, %50 : vector<8x128xf32>
    %c0_24 = arith.constant 0 : index
    %c0_25 = arith.constant 0 : index
    %c0_26 = arith.constant 0 : index
    %52 = vector.load %arg7[%c0_24, %c0_25, %c0_26] : memref<2x1x128xf32, #tpu.memory_space<vmem>>, vector<1x1x128xf32>
    %53 = vector.shape_cast %52 : vector<1x1x128xf32> to vector<1x128xf32>
    %54 = vector.broadcast %53 : vector<1x128xf32> to vector<8x128xf32>
    %55 = arith.addf %51, %54 : vector<8x128xf32>
    %56 = arith.truncf %55 : vector<8x128xf32> to vector<8x128xbf16>
    %c0_27 = arith.constant 0 : index
    %c0_28 = arith.constant 0 : index
    %c0_29 = arith.constant 0 : index
    %57 = vector.load %arg8[%c0_27, %c0_28, %c0_29] : memref<2x128x128xbf16, #tpu.memory_space<vmem>>, vector<1x128x128xbf16>
    %58 = vector.shape_cast %57 : vector<1x128x128xbf16> to vector<128x128xbf16>
    %cst_30 = arith.constant dense<0.000000e+00> : vector<8x128xf32>
    %59 = tpu.matmul %56, %58, %cst_30 {dimension_numbers = #tpu.dot_dimension_numbers<[1], [0], [0], [1], [0, 0, 1, 1], [], []>} : vector<8x128xbf16>, vector<128x128xbf16>, vector<8x128xf32> -> vector<8x128xf32>
    %60 = vector.extract_strided_slice %20 {offsets = [0, 1024], sizes = [8, 1024], strides = [1, 1]} : vector<8x2048xbf16> to vector<8x1024xbf16>
    %c1 = arith.constant 1 : index
    %c0_31 = arith.constant 0 : index
    %c0_32 = arith.constant 0 : index
    %61 = vector.load %arg4[%c1, %c0_31, %c0_32] : memref<2x1024x128xbf16, #tpu.memory_space<vmem>>, vector<1x1024x128xbf16>
    %62 = vector.shape_cast %61 : vector<1x1024x128xbf16> to vector<1024x128xbf16>
    %cst_33 = arith.constant dense<0.000000e+00> : vector<8x128xf32>
    %63 = tpu.matmul %60, %62, %cst_33 {dimension_numbers = #tpu.dot_dimension_numbers<[1], [0], [0], [1], [0, 0, 1, 1], [], []>} : vector<8x1024xbf16>, vector<1024x128xbf16>, vector<8x128xf32> -> vector<8x128xf32>
    %c1_34 = arith.constant 1 : index
    %c0_35 = arith.constant 0 : index
    %c0_36 = arith.constant 0 : index
    %64 = vector.load %arg5[%c1_34, %c0_35, %c0_36] : memref<2x1x128xf32, #tpu.memory_space<vmem>>, vector<1x1x128xf32>
    %65 = vector.shape_cast %64 : vector<1x1x128xf32> to vector<1x128xf32>
    %66 = vector.broadcast %65 : vector<1x128xf32> to vector<8x128xf32>
    %67 = arith.addf %63, %66 : vector<8x128xf32>
    %68 = arith.addf %67, %1 : vector<8x128xf32>
    %cst_37 = arith.constant dense<0.000000e+00> : vector<8xf32>
    %69 = vector.multi_reduction <add>, %68, %cst_37 [1] : vector<8x128xf32> to vector<8xf32>
    %70 = vector.shape_cast %69 : vector<8xf32> to vector<8x1xf32>
    %cst_38 = arith.constant 1.280000e+02 : f32
    %71 = vector.broadcast %cst_38 : f32 to vector<8x1xf32>
    %72 = arith.divf %70, %71 : vector<8x1xf32>
    %73 = vector.broadcast %72 : vector<8x1xf32> to vector<8x128xf32>
    %74 = arith.subf %68, %73 : vector<8x128xf32>
    %75 = arith.mulf %74, %74 : vector<8x128xf32>
    %cst_39 = arith.constant dense<0.000000e+00> : vector<8xf32>
    %76 = vector.multi_reduction <add>, %75, %cst_39 [1] : vector<8x128xf32> to vector<8xf32>
    %77 = vector.shape_cast %76 : vector<8xf32> to vector<8x1xf32>
    %cst_40 = arith.constant 1.280000e+02 : f32
    %78 = vector.broadcast %cst_40 : f32 to vector<8x1xf32>
    %79 = arith.divf %77, %78 : vector<8x1xf32>
    %80 = vector.broadcast %72 : vector<8x1xf32> to vector<8x128xf32>
    %81 = arith.subf %68, %80 : vector<8x128xf32>
    %cst_41 = arith.constant 9.99999974E-6 : f32
    %82 = vector.broadcast %cst_41 : f32 to vector<8x1xf32>
    %83 = arith.addf %79, %82 : vector<8x1xf32>
    %84 = math.rsqrt %83 : vector<8x1xf32>
    %85 = vector.broadcast %84 : vector<8x1xf32> to vector<8x128xf32>
    %86 = arith.mulf %81, %85 : vector<8x128xf32>
    %c1_42 = arith.constant 1 : index
    %c0_43 = arith.constant 0 : index
    %c0_44 = arith.constant 0 : index
    %87 = vector.load %arg6[%c1_42, %c0_43, %c0_44] : memref<2x1x128xf32, #tpu.memory_space<vmem>>, vector<1x1x128xf32>
    %88 = vector.shape_cast %87 : vector<1x1x128xf32> to vector<1x128xf32>
    %89 = vector.broadcast %88 : vector<1x128xf32> to vector<8x128xf32>
    %90 = arith.mulf %86, %89 : vector<8x128xf32>
    %c1_45 = arith.constant 1 : index
    %c0_46 = arith.constant 0 : index
    %c0_47 = arith.constant 0 : index
    %91 = vector.load %arg7[%c1_45, %c0_46, %c0_47] : memref<2x1x128xf32, #tpu.memory_space<vmem>>, vector<1x1x128xf32>
    %92 = vector.shape_cast %91 : vector<1x1x128xf32> to vector<1x128xf32>
    %93 = vector.broadcast %92 : vector<1x128xf32> to vector<8x128xf32>
    %94 = arith.addf %90, %93 : vector<8x128xf32>
    %95 = arith.truncf %94 : vector<8x128xf32> to vector<8x128xbf16>
    %c1_48 = arith.constant 1 : index
    %c0_49 = arith.constant 0 : index
    %c0_50 = arith.constant 0 : index
    %96 = vector.load %arg8[%c1_48, %c0_49, %c0_50] : memref<2x128x128xbf16, #tpu.memory_space<vmem>>, vector<1x128x128xbf16>
    %97 = vector.shape_cast %96 : vector<1x128x128xbf16> to vector<128x128xbf16>
    %cst_51 = arith.constant dense<0.000000e+00> : vector<8x128xf32>
    %98 = tpu.matmul %95, %97, %cst_51 {dimension_numbers = #tpu.dot_dimension_numbers<[1], [0], [0], [1], [0, 0, 1, 1], [], []>} : vector<8x128xbf16>, vector<128x128xbf16>, vector<8x128xf32> -> vector<8x128xf32>
    %99 = arith.addf %59, %98 : vector<8x128xf32>
    %c0_52 = arith.constant 0 : index
    %c0_53 = arith.constant 0 : index
    %100 = vector.load %arg9[%c0_52, %c0_53] : memref<1x128xf32, #tpu.memory_space<vmem>>, vector<1x128xf32>
    %101 = vector.broadcast %100 : vector<1x128xf32> to vector<8x128xf32>
    %102 = arith.addf %99, %101 : vector<8x128xf32>
    %c0_54 = arith.constant 0 : index
    %c0_55 = arith.constant 0 : index
    %103 = vector.load %arg10[%c0_54, %c0_55] : memref<8x128xf32, #tpu.memory_space<vmem>>, vector<8x128xf32>
    tpu.vector_store %arg10[%c0_54, %c0_55], %102 {strides = array<i32>} : memref<8x128xf32, #tpu.memory_space<vmem>>, vector<8x128xf32>,
    return
  }
  func.func @transform_0(%arg0: i32) -> (i32, i32) {
    %c0_i32 = arith.constant 0 : i32
    %c0_i32_0 = arith.constant 0 : i32
    return %arg0, %c0_i32 : i32, i32
  }
  func.func @transform_1(%arg0: i32) -> (i32, i32) {
    %c0_i32 = arith.constant 0 : i32
    %c0_i32_0 = arith.constant 0 : i32
    %c0_i32_1 = arith.constant 0 : i32
    return %c0_i32, %c0_i32_0 : i32, i32
  }
  func.func @transform_2(%arg0: i32) -> (i32, i32) {
    %c0_i32 = arith.constant 0 : i32
    %c0_i32_0 = arith.constant 0 : i32
    %c0_i32_1 = arith.constant 0 : i32
    return %c0_i32, %c0_i32_0 : i32, i32
  }
  func.func @transform_3(%arg0: i32) -> (i32, i32, i32) {
    %c0_i32 = arith.constant 0 : i32
    %c0_i32_0 = arith.constant 0 : i32
    %c0_i32_1 = arith.constant 0 : i32
    %c0_i32_2 = arith.constant 0 : i32
    return %c0_i32, %c0_i32_0, %c0_i32_1 : i32, i32, i32
  }
  func.func @transform_4(%arg0: i32) -> (i32, i32, i32) {
    %c0_i32 = arith.constant 0 : i32
    %c0_i32_0 = arith.constant 0 : i32
    %c0_i32_1 = arith.constant 0 : i32
    %c0_i32_2 = arith.constant 0 : i32
    return %c0_i32, %c0_i32_0, %c0_i32_1 : i32, i32, i32
  }
  func.func @transform_5(%arg0: i32) -> (i32, i32, i32) {
    %c0_i32 = arith.constant 0 : i32
    %c0_i32_0 = arith.constant 0 : i32
    %c0_i32_1 = arith.constant 0 : i32
    %c0_i32_2 = arith.constant 0 : i32
    return %c0_i32, %c0_i32_0, %c0_i32_1 : i32, i32, i32
  }
  func.func @transform_6(%arg0: i32) -> (i32, i32, i32) {
    %c0_i32 = arith.constant 0 : i32
    %c0_i32_0 = arith.constant 0 : i32
    %c0_i32_1 = arith.constant 0 : i32
    %c0_i32_2 = arith.constant 0 : i32
    return %c0_i32, %c0_i32_0, %c0_i32_1 : i32, i32, i32
  }
  func.func @transform_7(%arg0: i32) -> (i32, i32, i32) {
    %c0_i32 = arith.constant 0 : i32
    %c0_i32_0 = arith.constant 0 : i32
    %c0_i32_1 = arith.constant 0 : i32
    %c0_i32_2 = arith.constant 0 : i32
    return %c0_i32, %c0_i32_0, %c0_i32_1 : i32, i32, i32
  }
  func.func @transform_8(%arg0: i32) -> (i32, i32) {
    %c0_i32 = arith.constant 0 : i32
    %c0_i32_0 = arith.constant 0 : i32
    %c0_i32_1 = arith.constant 0 : i32
    return %c0_i32, %c0_i32_0 : i32, i32
  }
  func.func @transform_9(%arg0: i32) -> (i32, i32) {
    %c0_i32 = arith.constant 0 : i32
    %c0_i32_0 = arith.constant 0 : i32
    return %arg0, %c0_i32 : i32, i32
  }
}

</mosaic_0001>

<bundles_post_ra>
// kernel: tpu_custom_call.1
= control target key start
LH: loop header
LB: loop body
LE: loop exit
PB: predicated region body
PF: predicated region fallthrough
CT: control target
= control target key end

     0   :  { %s5460_s0 = inlined_call_operand.hbm [shape: bf16[16,128], index: 0, kind: input, shape index: {}]   ;;  %s5461_s1 = inlined_call_operand.hbm [shape: bf16[128,2048], index: 1, kind: input, shape index: {}]   ;;  %s5462_s2 = inlined_call_operand.hbm [shape: f32[1,2048], index: 2, kind: input, shape index: {}]   ;;  %s5463_s3 = inlined_call_operand.hbm [shape: bf16[2,1024,128], index: 3, kind: input, shape index: {}]   ;;  %s5464_s4 = inlined_call_operand.vmem [shape: f32[2,1,128], index: 4, kind: input, shape index: {}]   ;;  %s5465_s5 = inlined_call_operand.vmem [shape: f32[2,1,128], index: 5, kind: input, shape index: {}]   ;;  %s5466_s6 = inlined_call_operand.hbm [shape: f32[2,1,128], index: 6, kind: input, shape index: {}]   ;;  %s5467_s7 = inlined_call_operand.hbm [shape: bf16[2,128,128], index: 7, kind: input, shape index: {}]   ;;  %s5468_s8 = inlined_call_operand.vmem [shape: f32[1,128], index: 8, kind: input, shape index: {}]   ;;  %s5469_s9 = inlined_call_operand.hbm [shape: f32[16,128], index: 9, kind: output, shape index: {}]  }
   0x1   :  { %5470 = sst [smem:[#allocation19_spill]] %s5461_s1 }
   0x2   :  { %5471 = sst [smem:[#allocation20_spill]] %s5462_s2 }
   0x3   :  { %5472 = sst [smem:[#allocation21_spill]] %s5463_s3 }
   0x4   :  { %5473 = sst [smem:[#allocation22_spill]] %s5466_s6 }
   0x5   :  { %14 = vsyncpa [#allocation3], 0 }
   0x6   :  { %16 = vsyncpa [#allocation3 + $0x1], 0 }
   0x7   :  { %17 = vsyncpa [#allocation6], 0 }
   0x8   :  { %18 = vsyncpa [#allocation9], 0 }
   0x9   :  { %19 = vsyncpa [#allocation12], 0 }
   0xa   :  { %20 = vsyncpa [#allocation4], 0 }
   0xb   :  { %22 = vsyncpa [#allocation4 + $0x1], 0  ;;  %s5117_s30 = smov 0   ;;  %s5119_s10 = smov 0  }
   0xc   :  { %s5121_s11 = smov 0   ;;  %s5123_s12 = smov 0  }
   0xd LB: > { %s5474_s1 = sld [smem:[#allocation19_spill]]  ;;  %s5141_s16 = sadd.s32 4294967295, %s5054_s12   ;;  %s5054_s12 = sphi %s5123_s12, %s5489_s12   ;;  %s5050_s11 = sphi %s5121_s11, %s5488_s11   ;;  %s5046_s10 = sphi %s5119_s10, %s5487_s10   ;;  %s5042_s30 = sphi %s5117_s30, %s5486_s30  }
   0xe   : > { %p3264_p0 = scmp.ge.s32.totalorder %s5054_s12, 1  ;;  %p49_p1 = scmp.eq.s32.totalorder %s5141_s16, 0 }
   0xf   : > { %p253_p2 = scmp.lt.s32.totalorder %s5054_s12, 3  ;;  %s5056_s18 = smov [#allocation5]  }
  0x10   : > { %s266_s19 = sshll.u32 %s5056_s18, 4  ;;  %s5476_s3 = sld [smem:[#allocation21_spill]]  ;;  %s267_s19 = int_to_ptr.vmem [resolvable:$true] %s266_s19 }
  0x11   : > { %p5146_p3 = pnand %p3264_p0, %p253_p2  ;;  %s5057_s24 = smov [#allocation8]  }
  0x12   : > { %s292_s25 = sshll.u32 %s5057_s24, 4  ;;  %s5058_s26 = smov 1024   ;;  %s293_s25 = int_to_ptr.vmem [resolvable:$true] %s292_s25 }
  0x13   : > { %s264_s15 = sshll.u32 %s5474_s1, 4  ;;  %p4671_p4 = pneg %p5146_p3  ;;  %s265_s15 = int_to_ptr.hbm [resolvable:$true] %s264_s15 }
  0x14   : > { %s5059_s27 = smov 64   ;;  %s5478_s2 = sld [smem:[#allocation20_spill]] }
  0x15   : > { %p5158_p6 = pnand %p4671_p4, %p49_p1  ;;  %s5060_s14 = smov 4  }
  0x16   : > { %s290_s22 = sshll.u32 %s5476_s3, 4  ;;  %s5061_s18 = smov [#allocation7]   ;;  %s291_s22 = int_to_ptr.hbm [resolvable:$true] %s290_s22 }
  0x17   : > { %4674 = dma.hbm_to_vmem [thread:$0]  (!%p5158_p6), %s265_s15, 16384, %s267_s19, [#allocation6], %s5058_s26, %s5058_s26, %s5059_s27  }
  0x18   : > { %4680 = dma.hbm_to_vmem [thread:$0]  (!%p5158_p6), %s291_s22, 16384, %s293_s25, [#allocation9], %s5059_s27, %s5059_s27, %s5060_s14  }
  0x19   : > { %s281_s20 = sshll.u32 %s5061_s18, 4  ;;  %s5479_s6 = sld [smem:[#allocation22_spill]]  ;;  %s282_s20 = int_to_ptr.vmem [resolvable:$true] %s281_s20 }
  0x1a   : > { %s279_s13 = sshll.u32 %s5478_s2, 4  ;;  %s5062_s15 = smov [#allocation10]   ;;  %s280_s13 = int_to_ptr.hbm [resolvable:$true] %s279_s13 }
  0x1b   : > { %4677 = dma.hbm_to_vmem [thread:$0]  (!%p5158_p6), %s280_s13, 256, %s282_s20, [#allocation6]  }
  0x1c   : > { %s312_s19 = sshll.u32 %s5062_s15, 4  ;;  %s324_s1 = sshll.u32 %s5467_s7, 4  ;;  %s313_s19 = int_to_ptr.vmem [resolvable:$true] %s312_s19  ;;  %s325_s1 = int_to_ptr.hbm [resolvable:$true] %s324_s1 }
  0x1d   : > { %s5063_s26 = smov 16   ;;  %s5064_s28 = smov 1  }
  0x1e   : > { %s5065_s29 = smov [#allocation11]   ;;  %s3263_s18 = sadd.s32 4294967294, %s5054_s12  }
  0x1f   : > { %s310_s24 = sshll.u32 %s5479_s6, 4  ;;  %s326_s13 = sshll.u32 %s5065_s29, 4  ;;  %s311_s24 = int_to_ptr.hbm [resolvable:$true] %s310_s24  ;;  %s327_s13 = int_to_ptr.vmem [resolvable:$true] %s326_s13 }
  0x20   : > { %4683 = dma.hbm_to_vmem [thread:$0]  (!%p5158_p6), %s311_s24, 32, %s313_s19, [#allocation9], %s5063_s26, %s5063_s26, %s5064_s28  }
  0x21   : > { %4686 = dma.hbm_to_vmem [thread:$0]  (!%p5158_p6), %s325_s1, 2048, %s327_s13, [#allocation12], %s5059_s27, %s5059_s27, %s5060_s14  }
  0x22   : > { %s5183_s20 = sadd.s32 1, %s5054_s12   ;;  %s35_s15 = sadd.s32 1, %s5050_s11 }
  0x23   : > { %s32_s21 = ssub.s32 %s5054_s12, %s5183_s20  ;;  %p42_p8 = scmp.ne.s32.totalorder %s5050_s11, %s5046_s10 }
  0x24   : > { %p33_p7 = scmp.eq.s32.totalorder %s32_s21, 0  ;;  %p43_p9 = scmp.eq.s32.totalorder %s5054_s12, 0 }
  0x25   : > { %p48_p10 = scmp.ne.s32.totalorder %s5046_s10, %s5042_s30  ;;  %p240_p13 = scmp.eq.s32.totalorder %s5141_s16, 1 }
  0x26   : > { %s5194_s24 = scalar_select %p33_p7, %s5050_s11, %s35_s15  }
  0x27   : > { %p5196_p11 = por %p43_p9, %p42_p8  ;;  %p5202_p12 = por %p49_p1, %p48_p10 }
  0x28   : > { %p246_p0 = scmp.eq.s32.totalorder %s3263_s18, 1  ;;  %p4700_p2 = scmp.lt.s32.totalorder %s5054_s12, 2 }
  0x29   : > { %s343_s27 = sand.u32 1, %s5050_s11   ;;  %p5209_p4 = por %p240_p13, %p42_p8 }
  0x2a   : > { %p5213_p6 = por %p246_p0, %p48_p10  ;;  %s3271_s25 = sshll.u32 %s343_s27, 2 }
  0x2b   : > { %s3272_s1 = sshll.u32 %s5054_s12, 2  ;;  %s347_s13 = scalar_lea.vmem [#allocation2], %s3271_s25 }
  0x2c   : > { %s351_s29 = scalar_lea.hbm %s5460_s0, %s3272_s1  ;;  %s355_s21 = sshll.u32 %s347_s13, 4  ;;  %s356_s21 = int_to_ptr.vmem [resolvable:$true] %s355_s21 }
  0x2d   : > { %s353_s15 = sshll.u32 %s351_s29, 4  ;;  %p5223_p7 = pnand %p4700_p2, %p5196_p11  ;;  %s354_s15 = int_to_ptr.hbm [resolvable:$true] %s353_s15 }
  0x2e   : > { %s344_s2 = scalar_lea.sflag [#allocation3], %s343_s27  ;;  %s4946_s3 = sshra.s32 %s354_s15, 4  ;;  %s4947_s3 = int_to_ptr.hbm [resolvable:$true] %s4946_s3 }
  0x2f   : > { %s4948_s6 = scalar_lea.hbm %s4947_s3, 4  ;;  %p4950_p9 = pneg %p5223_p7 }
  0x30   : > { %p4949_p8 = scmp.ne.s32.totalorder %s4947_s3, %s4948_s6  ;;  %s4953_s26 = scalar_lea.hbm %s5460_s0, 8 }
  0x31   : > { %p4954_p11 = scmp.lt.s32.totalorder %s4947_s3, %s5460_s0  ;;  %p4955_p0 = scmp.lt.s32.totalorder %s4953_s26, %s4948_s6 }
  0x32   : > { %p4951_p10 = pnand %p4950_p9, %p4949_p8 }
  0x33   : > { %p4956_p2 = por %p4955_p0, %p4954_p11 }
  0x34   : > { %p4952_p13 = pneg %p4951_p10 }
  0x36   : > { %p4957_p5 = pnand %p4956_p2, %p4952_p13 }
  0x38   : > { %4960 = shalt.err (!%p4957_p5)
}
  0x39   : > { %4690 = dma.hbm_to_vmem [thread:$0]  (!%p5223_p7), %s354_s15, 64, %s356_s21, %s344_s2  }
  0x3a   : > { %364 = sbr.rel (%p5146_p3) target bundleno = 907 (0x38b), region = 56  ;;  %s5240_s27 = sand.u32 (!%p5146_p3), 1, %s5046_s10  }
  0x3b   : > { %s3274_s29 = sshll.u32 (!%p5146_p3), %s5240_s27, 2  ;;  %s367_s13 = scalar_lea.sflag (!%p5146_p3), [#allocation3], %s5240_s27 }
  0x3c   : > { %s5244_s25 = scalar_lea.vmem (!%p5146_p3), [#allocation2], %s3274_s29 }
  0x3f   : > { %5021 = dma.done.wait (%p5202_p12), %s367_s13, 64  }
  0x40   : > { %5023 = vsyncadd (%p5202_p12), %s367_s13, 4294967232 }
  0x41   : > { %5025 = dma.done.wait (%p49_p1), [#allocation6], 16640  }
  0x42   : > { %5027 = vsyncadd (%p49_p1), [#allocation6], 4294950656 }
  0x43   : > { %5029 = dma.done.wait (%p49_p1), [#allocation9], 16416  }
  0x44   : > { %5031 = vsyncadd (%p49_p1), [#allocation9], 4294950880 }
  0x45   : > { %5033 = dma.done.wait (%p49_p1), [#allocation12], 2048  }
  0x46   : > { %5035 = vsyncadd (%p49_p1), [#allocation12], 4294965248  ;;  %v3731_v0 = vld [vmem:[#allocation5 + $0x380] sm:$0xf]  ;;  %v4487_v2 = vld [vmem:[#allocation5 + $0x384] sm:$0xf] }
  0x47   : > { %v4495_v1 = vld [vmem:[#allocation5 + $0x3bc] sm:$0xf0]  ;;  %v3733_v4 = vld [vmem:[#allocation5 + $0x3c0] sm:$0xf0]  ;;  %v3739_v5 = vld [vmem:[#allocation5 + $0x388] sm:$0xf] }
  0x48   : > { %v3732_v3 = vor.u32 %v4495_v1, %v3731_v0  ;;  %v4496_v6 = vld [vmem:[#allocation5 + $0x3c4] sm:$0xf0]  ;;  %v3736_v7 = vor.u32 %v4487_v2, %v3733_v4  ;;  %v4488_v9 = vld [vmem:[#allocation5 + $0x38c] sm:$0xf]  ;;  %v3667_v11 = vld [vmem:[#allocation5 + $0x300] sm:$0xf] }
  0x49   : > { %v3740_v8 = vor.u32 %v4496_v6, %v3739_v5  ;;  %v3741_v10 = vld [vmem:[#allocation5 + $0x3c8] sm:$0xf0]  ;;  %v4479_v13 = vld [vmem:[#allocation5 + $0x33c] sm:$0xf0]  ;;  %v4471_v14 = vld [vmem:[#allocation5 + $0x304] sm:$0xf] }
  0x4a   : > { %1237 = vmatpush.bf16.msra.mxu0 %v3732_v3  ;;  %v3744_v12 = vor.u32 %v4488_v9, %v3741_v10  ;;  %v3669_v15 = vld [vmem:[#allocation5 + $0x340] sm:$0xf0]  ;;  %1250 = vmatpush.bf16.msra.mxu1 %v3736_v7  ;;  %v3668_v16 = vor.u32 %v4479_v13, %v3667_v11  ;;  %v3675_v18 = vld [vmem:[#allocation5 + $0x308] sm:$0xf]  ;;  %v4472_v20 = vld [vmem:[#allocation5 + $0x30c] sm:$0xf] }
  0x4b   : > { %1263 = vmatpush.bf16.msra.mxu2 %v3740_v8  ;;  %v3672_v17 = vor.u32 %v4471_v14, %v3669_v15  ;;  %v4480_v19 = vld [vmem:[#allocation5 + $0x344] sm:$0xf0]  ;;  %v3677_v22 = vld [vmem:[#allocation5 + $0x348] sm:$0xf0]  ;;  %v3603_v23 = vld [vmem:[#allocation5 + $0x280] sm:$0xf] }
  0x4c   : > { %1276 = vmatpush.bf16.msra.mxu3 %v3744_v12  ;;  %v3676_v21 = vor.u32 %v4480_v19, %v3675_v18  ;;  %v4463_v24 = vld [vmem:[#allocation5 + $0x2bc] sm:$0xf0]  ;;  %v3680_v25 = vor.u32 %v4472_v20, %v3677_v22  ;;  %v4455_v26 = vld [vmem:[#allocation5 + $0x284] sm:$0xf]  ;;  %v3611_v28 = vld [vmem:[#allocation5 + $0x288] sm:$0xf] }
  0x4d   : > { %v3605_v27 = vld [vmem:[#allocation5 + $0x2c0] sm:$0xf0]  ;;  %v3604_v29 = vor.u32 %v4463_v24, %v3603_v23  ;;  %v4464_v30 = vld [vmem:[#allocation5 + $0x2c4] sm:$0xf0]  ;;  %v4456_v31 = vld [vmem:[#allocation5 + $0x28c] sm:$0xf] }
  0x4e   : > { %1238 = vmatpush.bf16.msra.mxu0 %v3668_v16  ;;  %v3613_v32 = vld [vmem:[#allocation5 + $0x2c8] sm:$0xf0]  ;;  %1251 = vmatpush.bf16.msra.mxu1 %v3672_v17  ;;  %v3608_v33 = vor.u32 %v4455_v26, %v3605_v27  ;;  %v3612_v34 = vor.u32 %v4464_v30, %v3611_v28  ;;  %v3539_v35 = vld [vmem:[#allocation5 + $0x200] sm:$0xf]  ;;  %v4439_v37 = vld [vmem:[#allocation5 + $0x204] sm:$0xf] }
  0x4f   : > { %1264 = vmatpush.bf16.msra.mxu2 %v3676_v21  ;;  %v4447_v36 = vld [vmem:[#allocation5 + $0x23c] sm:$0xf0]  ;;  %v3616_v38 = vor.u32 %v4456_v31, %v3613_v32  ;;  %v3541_v39 = vld [vmem:[#allocation5 + $0x240] sm:$0xf0]  ;;  %v3547_v40 = vld [vmem:[#allocation5 + $0x208] sm:$0xf] }
  0x50   : > { %1277 = vmatpush.bf16.msra.mxu3 %v3680_v25  ;;  %v4448_v41 = vld [vmem:[#allocation5 + $0x244] sm:$0xf0]  ;;  %v4440_v42 = vld [vmem:[#allocation5 + $0x20c] sm:$0xf]  ;;  %v3540_v44 = vor.u32 %v4447_v36, %v3539_v35  ;;  %v3544_v45 = vor.u32 %v4439_v37, %v3541_v39  ;;  %v3475_v47 = vld [vmem:[#allocation5 + $0x180] sm:$0xf] }
  0x51   : > { %v3549_v43 = vld [vmem:[#allocation5 + $0x248] sm:$0xf0]  ;;  %v3548_v46 = vor.u32 %v4448_v41, %v3547_v40  ;;  %v4431_v48 = vld [vmem:[#allocation5 + $0x1bc] sm:$0xf0]  ;;  %v4423_v49 = vld [vmem:[#allocation5 + $0x184] sm:$0xf] }
  0x52   : > { %1239 = vmatpush.bf16.msra.mxu0 %v3604_v29  ;;  %1252 = vmatpush.bf16.msra.mxu1 %v3608_v33  ;;  %v3552_v50 = vor.u32 %v4440_v42, %v3549_v43  ;;  %v3477_v51 = vld [vmem:[#allocation5 + $0x1c0] sm:$0xf0]  ;;  %v3483_v52 = vld [vmem:[#allocation5 + $0x188] sm:$0xf]  ;;  %v4424_v54 = vld [vmem:[#allocation5 + $0x18c] sm:$0xf]  ;;  %v3476_v56 = vor.u32 %v4431_v48, %v3475_v47 }
  0x53   : > { %1265 = vmatpush.bf16.msra.mxu2 %v3612_v34  ;;  %v4432_v53 = vld [vmem:[#allocation5 + $0x1c4] sm:$0xf0]  ;;  %v3485_v55 = vld [vmem:[#allocation5 + $0x1c8] sm:$0xf0]  ;;  %v3480_v57 = vor.u32 %v4423_v49, %v3477_v51  ;;  %v3411_v59 = vld [vmem:[#allocation5 + $0x100] sm:$0xf] }
  0x54   : > { %1278 = vmatpush.bf16.msra.mxu3 %v3616_v38  ;;  %v3484_v58 = vor.u32 %v4432_v53, %v3483_v52  ;;  %v4415_v60 = vld [vmem:[#allocation5 + $0x13c] sm:$0xf0]  ;;  %v4407_v61 = vld [vmem:[#allocation5 + $0x104] sm:$0xf]  ;;  %v3488_v62 = vor.u32 %v4424_v54, %v3485_v55  ;;  %v3419_v0 = vld [vmem:[#allocation5 + $0x108] sm:$0xf] }
  0x55   : > { %v3413_v63 = vld [vmem:[#allocation5 + $0x140] sm:$0xf0]  ;;  %v4416_v1 = vld [vmem:[#allocation5 + $0x144] sm:$0xf0]  ;;  %v4408_v2 = vld [vmem:[#allocation5 + $0x10c] sm:$0xf]  ;;  %v3412_v4 = vor.u32 %v4415_v60, %v3411_v59 }
  0x56   : > { %1240 = vmatpush.bf16.msra.mxu0 %v3540_v44  ;;  %1253 = vmatpush.bf16.msra.mxu1 %v3544_v45  ;;  %v3421_v3 = vld [vmem:[#allocation5 + $0x148] sm:$0xf0]  ;;  %v3416_v5 = vor.u32 %v4407_v61, %v3413_v63  ;;  %v3420_v6 = vor.u32 %v4416_v1, %v3419_v0  ;;  %v3347_v7 = vld [vmem:[#allocation5 + $0x80] sm:$0xf]  ;;  %v4391_v9 = vld [vmem:[#allocation5 + $0x84] sm:$0xf] }
  0x57   : > { %1266 = vmatpush.bf16.msra.mxu2 %v3548_v46  ;;  %v4399_v8 = vld [vmem:[#allocation5 + $0xbc] sm:$0xf0]  ;;  %v3424_v10 = vor.u32 %v4408_v2, %v3421_v3  ;;  %v3349_v11 = vld [vmem:[#allocation5 + $0xc0] sm:$0xf0]  ;;  %v3355_v12 = vld [vmem:[#allocation5 + $0x88] sm:$0xf] }
  0x58   : > { %1279 = vmatpush.bf16.msra.mxu3 %v3552_v50  ;;  %v4400_v13 = vld [vmem:[#allocation5 + $0xc4] sm:$0xf0]  ;;  %v4392_v14 = vld [vmem:[#allocation5 + $0x8c] sm:$0xf]  ;;  %v3348_v16 = vor.u32 %v4399_v8, %v3347_v7  ;;  %v3283_v17 = vld [vmem:[#allocation5] sm:$0xf]  ;;  %v3352_v19 = vor.u32 %v4391_v9, %v3349_v11 }
  0x59   : > { %v3357_v15 = vld [vmem:[#allocation5 + $0xc8] sm:$0xf0]  ;;  %v4383_v18 = vld [vmem:[#allocation5 + $0x3c] sm:$0xf0]  ;;  %v3356_v20 = vor.u32 %v4400_v13, %v3355_v12  ;;  %v4375_v21 = vld [vmem:[#allocation5 + $0x4] sm:$0xf] }
  0x5a   : > { %1241 = vmatpush.bf16.msra.mxu0 %v3476_v56  ;;  %1254 = vmatpush.bf16.msra.mxu1 %v3480_v57  ;;  %v3285_v22 = vld [vmem:[#allocation5 + $0x40] sm:$0xf0]  ;;  %v3291_v23 = vld [vmem:[#allocation5 + $0x8] sm:$0xf]  ;;  %v3360_v24 = vor.u32 %v4392_v14, %v3357_v15  ;;  %v4376_v26 = vld [vmem:[#allocation5 + $0xc] sm:$0xf]  ;;  %v3284_v31 = vor.u32 %v4383_v18, %v3283_v17 }
  0x5b   : > { %1267 = vmatpush.bf16.msra.mxu2 %v3484_v58  ;;  %v4384_v25 = vld [vmem:[#allocation5 + $0x44] sm:$0xf0]  ;;  %v3293_v27 = vld [vmem:[#allocation5 + $0x48] sm:$0xf0]  ;;  %v3747_v28 = vld [vmem:[#allocation5 + $0x390] sm:$0xf]  ;;  %v3288_v35 = vor.u32 %v4375_v21, %v3285_v22 }
  0x5c   : > { %1280 = vmatpush.bf16.msra.mxu3 %v3488_v62  ;;  %v4497_v29 = vld [vmem:[#allocation5 + $0x3cc] sm:$0xf0]  ;;  %v4489_v30 = vld [vmem:[#allocation5 + $0x394] sm:$0xf]  ;;  %v3755_v33 = vld [vmem:[#allocation5 + $0x398] sm:$0xf]  ;;  %v3292_v36 = vor.u32 %v4384_v25, %v3291_v23  ;;  %v3296_v39 = vor.u32 %v4376_v26, %v3293_v27 }
  0x5d   : > { %v3749_v32 = vld [vmem:[#allocation5 + $0x3d0] sm:$0xf0]  ;;  %v4498_v34 = vld [vmem:[#allocation5 + $0x3d4] sm:$0xf0]  ;;  %v4490_v37 = vld [vmem:[#allocation5 + $0x39c] sm:$0xf]  ;;  %v3748_v40 = vor.u32 %v4497_v29, %v3747_v28 }
  0x5e   : > { %1242 = vmatpush.bf16.msra.mxu0 %v3412_v4  ;;  %1255 = vmatpush.bf16.msra.mxu1 %v3416_v5  ;;  %v3757_v38 = vld [vmem:[#allocation5 + $0x3d8] sm:$0xf0]  ;;  %v3752_v41 = vor.u32 %v4489_v30, %v3749_v32  ;;  %v3756_v42 = vor.u32 %v4498_v34, %v3755_v33  ;;  %v3683_v43 = vld [vmem:[#allocation5 + $0x310] sm:$0xf]  ;;  %v4473_v45 = vld [vmem:[#allocation5 + $0x314] sm:$0xf] }
  0x5f   : > { %1268 = vmatpush.bf16.msra.mxu2 %v3420_v6  ;;  %v4481_v44 = vld [vmem:[#allocation5 + $0x34c] sm:$0xf0]  ;;  %v3760_v46 = vor.u32 %v4490_v37, %v3757_v38  ;;  %v3685_v47 = vld [vmem:[#allocation5 + $0x350] sm:$0xf0]  ;;  %v3691_v48 = vld [vmem:[#allocation5 + $0x318] sm:$0xf] }
  0x60   : > { %1281 = vmatpush.bf16.msra.mxu3 %v3424_v10  ;;  %v4482_v49 = vld [vmem:[#allocation5 + $0x354] sm:$0xf0]  ;;  %v4474_v51 = vld [vmem:[#allocation5 + $0x31c] sm:$0xf]  ;;  %v3684_v53 = vor.u32 %v4481_v44, %v3683_v43  ;;  %v3688_v54 = vor.u32 %v4473_v45, %v3685_v47  ;;  %v3619_v56 = vld [vmem:[#allocation5 + $0x290] sm:$0xf] }
  0x61   : > { %v5263_v50 = vld [vmem:[%s5244_s25] sm:$0xf]  ;;  %v3692_v55 = vor.u32 %v4482_v49, %v3691_v48  ;;  %v4465_v57 = vld [vmem:[#allocation5 + $0x2cc] sm:$0xf0]  ;;  %v4457_v58 = vld [vmem:[#allocation5 + $0x294] sm:$0xf] }
  0x62   : > { %1243 = vmatpush.bf16.msra.mxu0 %v3348_v16  ;;  %1256 = vmatpush.bf16.msra.mxu1 %v3352_v19  ;;  %v3693_v52 = vld [vmem:[#allocation5 + $0x358] sm:$0xf0]  ;;  %v3621_v60 = vld [vmem:[#allocation5 + $0x2d0] sm:$0xf0]  ;;  %v3627_v61 = vld [vmem:[#allocation5 + $0x298] sm:$0xf]  ;;  %v3620_v1 = vor.u32 %v4465_v57, %v3619_v56 }
  0x63   : > { %1269 = vmatpush.bf16.msra.mxu2 %v3356_v20  ;;  %v3696_v59 = vor.u32 %v4474_v51, %v3693_v52  ;;  %v4466_v62 = vld [vmem:[#allocation5 + $0x2d4] sm:$0xf0]  ;;  %v4458_v63 = vld [vmem:[#allocation5 + $0x29c] sm:$0xf]  ;;  %v3624_v2 = vor.u32 %v4457_v58, %v3621_v60  ;;  %v3555_v4 = vld [vmem:[#allocation5 + $0x210] sm:$0xf] }
  0x64   : > { %1282 = vmatpush.bf16.msra.mxu3 %v3360_v24  ;;  %v3629_v0 = vld [vmem:[#allocation5 + $0x2d8] sm:$0xf0]  ;;  %v3628_v3 = vor.u32 %v4466_v62, %v3627_v61  ;;  %v4449_v5 = vld [vmem:[#allocation5 + $0x24c] sm:$0xf0]  ;;  %v4441_v6 = vld [vmem:[#allocation5 + $0x214] sm:$0xf] }
  0x65   : > { %v3632_v7 = vor.u32 %v4458_v63, %v3629_v0  ;;  %v3557_v8 = vld [vmem:[#allocation5 + $0x250] sm:$0xf0]  ;;  %v3563_v9 = vld [vmem:[#allocation5 + $0x218] sm:$0xf]  ;;  %v4442_v11 = vld [vmem:[#allocation5 + $0x21c] sm:$0xf]  ;;  %v3556_v13 = vor.u32 %v4449_v5, %v3555_v4 }
  0x66   : > { %1244 = vmatpush.bf16.msra.mxu0 %v3284_v31  ;;  %1257 = vmatpush.bf16.msra.mxu1 %v3288_v35  ;;  %v4450_v10 = vld [vmem:[#allocation5 + $0x254] sm:$0xf0]  ;;  %v3565_v12 = vld [vmem:[#allocation5 + $0x258] sm:$0xf0]  ;;  %v3560_v14 = vor.u32 %v4441_v6, %v3557_v8  ;;  %v3491_v16 = vld [vmem:[#allocation5 + $0x190] sm:$0xf] }
  0x67   : > { %1270 = vmatpush.bf16.msra.mxu2 %v3292_v36  ;;  %v3564_v15 = vor.u32 %v4450_v10, %v3563_v9  ;;  %v4433_v17 = vld [vmem:[#allocation5 + $0x1cc] sm:$0xf0]  ;;  %v4425_v18 = vld [vmem:[#allocation5 + $0x194] sm:$0xf]  ;;  %v3568_v19 = vor.u32 %v4442_v11, %v3565_v12  ;;  %v3499_v21 = vld [vmem:[#allocation5 + $0x198] sm:$0xf] }
  0x68   : > { %1283 = vmatpush.bf16.msra.mxu3 %v3296_v39  ;;  %v3493_v20 = vld [vmem:[#allocation5 + $0x1d0] sm:$0xf0]  ;;  %v4434_v22 = vld [vmem:[#allocation5 + $0x1d4] sm:$0xf0]  ;;  %v4426_v23 = vld [vmem:[#allocation5 + $0x19c] sm:$0xf]  ;;  %v3492_v25 = vor.u32 %v4433_v17, %v3491_v16 }
  0x69   : > { %1245 = vmatmul.bf16.vlgmr.msra.gmra.mxu0 %v5263_v50  ;;  %1258 = vmatmul.bf16.vlgmr.msra.gmra.mxu1 %v5263_v50  ;;  %v3501_v24 = vld [vmem:[#allocation5 + $0x1d8] sm:$0xf0]  ;;  %v3496_v26 = vor.u32 %v4425_v18, %v3493_v20  ;;  %v3500_v27 = vor.u32 %v4434_v22, %v3499_v21  ;;  %v3427_v28 = vld [vmem:[#allocation5 + $0x110] sm:$0xf]  ;;  %v4409_v30 = vld [vmem:[#allocation5 + $0x114] sm:$0xf] }
  0x6a   : > { %1289 = vmatpush.bf16.msrb.mxu0 %v3748_v40  ;;  %1302 = vmatpush.bf16.msrb.mxu1 %v3752_v41  ;;  %v4417_v29 = vld [vmem:[#allocation5 + $0x14c] sm:$0xf0]  ;;  %v3504_v31 = vor.u32 %v4426_v23, %v3501_v24  ;;  %v3429_v32 = vld [vmem:[#allocation5 + $0x150] sm:$0xf0]  ;;  %v3435_v33 = vld [vmem:[#allocation5 + $0x118] sm:$0xf] }
  0x6b   : > { %1315 = vmatpush.bf16.msrb.mxu2 %v3756_v42  ;;  %1284 = vmatmul.bf16.vlgmr.msra.gmra.mxu3 %v5263_v50  ;;  %v4418_v34 = vld [vmem:[#allocation5 + $0x154] sm:$0xf0]  ;;  %v4410_v35 = vld [vmem:[#allocation5 + $0x11c] sm:$0xf]  ;;  %v3428_v37 = vor.u32 %v4417_v29, %v3427_v28  ;;  %v3432_v38 = vor.u32 %v4409_v30, %v3429_v32  ;;  %v3363_v40 = vld [vmem:[#allocation5 + $0x90] sm:$0xf] }
  0x6c   : > { %1328 = vmatpush.bf16.msrb.mxu3 %v3760_v46  ;;  %1271 = vmatmul.bf16.vlgmr.msra.gmra.mxu2 %v5263_v50  ;;  %v3437_v36 = vld [vmem:[#allocation5 + $0x158] sm:$0xf0]  ;;  %v3436_v39 = vor.u32 %v4418_v34, %v3435_v33  ;;  %v4401_v41 = vld [vmem:[#allocation5 + $0xcc] sm:$0xf0]  ;;  %v4393_v42 = vld [vmem:[#allocation5 + $0x94] sm:$0xf] }
  0x6d   : > { %v3440_v43 = vor.u32 %v4410_v35, %v3437_v36  ;;  %v3365_v44 = vld [vmem:[#allocation5 + $0xd0] sm:$0xf0]  ;;  %v3371_v45 = vld [vmem:[#allocation5 + $0x98] sm:$0xf]  ;;  %v4394_v47 = vld [vmem:[#allocation5 + $0x9c] sm:$0xf]  ;;  %v3364_v49 = vor.u32 %v4401_v41, %v3363_v40 }
  0x6e   : > { %1290 = vmatpush.bf16.msrb.mxu0 %v3684_v53  ;;  %1303 = vmatpush.bf16.msrb.mxu1 %v3688_v54  ;;  %v4402_v46 = vld [vmem:[#allocation5 + $0xd4] sm:$0xf0]  ;;  %v3373_v48 = vld [vmem:[#allocation5 + $0xd8] sm:$0xf0]  ;;  %v3299_v51 = vld [vmem:[#allocation5 + $0x10] sm:$0xf]  ;;  %v3368_v53 = vor.u32 %v4393_v42, %v3365_v44 }
  0x6f   : > { %1316 = vmatpush.bf16.msrb.mxu2 %v3692_v55  ;;  %v4385_v52 = vld [vmem:[#allocation5 + $0x4c] sm:$0xf0]  ;;  %v3372_v54 = vor.u32 %v4402_v46, %v3371_v45  ;;  %v4377_v55 = vld [vmem:[#allocation5 + $0x14] sm:$0xf]  ;;  %v3307_v57 = vld [vmem:[#allocation5 + $0x18] sm:$0xf]  ;;  %v3376_v58 = vor.u32 %v4394_v47, %v3373_v48 }
  0x70   : > { %1329 = vmatpush.bf16.msrb.mxu3 %v3696_v59  ;;  %v3301_v56 = vld [vmem:[#allocation5 + $0x50] sm:$0xf0]  ;;  %v4386_v59 = vld [vmem:[#allocation5 + $0x54] sm:$0xf0]  ;;  %v4378_v60 = vld [vmem:[#allocation5 + $0x1c] sm:$0xf] }
  0x71   : > { %v3309_v61 = vld [vmem:[#allocation5 + $0x58] sm:$0xf0]  ;;  %v3763_v62 = vld [vmem:[#allocation5 + $0x3a0] sm:$0xf]  ;;  %v4491_v0 = vld [vmem:[#allocation5 + $0x3a4] sm:$0xf]  ;;  %v3304_v5 = vor.u32 %v4377_v55, %v3301_v56  ;;  %v3308_v6 = vor.u32 %v4386_v59, %v3307_v57 }
  0x72   : > { %1291 = vmatpush.bf16.msrb.mxu0 %v3620_v1  ;;  %1304 = vmatpush.bf16.msrb.mxu1 %v3624_v2  ;;  %v4499_v63 = vld [vmem:[#allocation5 + $0x3dc] sm:$0xf0]  ;;  %v3300_v1 = vor.u32 %v4385_v52, %v3299_v51  ;;  %v3765_v2 = vld [vmem:[#allocation5 + $0x3e0] sm:$0xf0]  ;;  %v4500_v4 = vld [vmem:[#allocation5 + $0x3e4] sm:$0xf0]  ;;  %v3312_v9 = vor.u32 %v4378_v60, %v3309_v61 }
  0x73   : > { %1317 = vmatpush.bf16.msrb.mxu2 %v3628_v3  ;;  %v3771_v3 = vld [vmem:[#allocation5 + $0x3a8] sm:$0xf]  ;;  %v3773_v8 = vld [vmem:[#allocation5 + $0x3e8] sm:$0xf0]  ;;  %v3764_v10 = vor.u32 %v4499_v63, %v3763_v62  ;;  %v3768_v11 = vor.u32 %v4491_v0, %v3765_v2  ;;  %v3701_v17 = vld [vmem:[#allocation5 + $0x360] sm:$0xf0] }
  0x74   : > { %1330 = vmatpush.bf16.msrb.mxu3 %v3632_v7  ;;  %v4492_v7 = vld [vmem:[#allocation5 + $0x3ac] sm:$0xf]  ;;  %v3772_v12 = vor.u32 %v4500_v4, %v3771_v3  ;;  %v3707_v18 = vld [vmem:[#allocation5 + $0x328] sm:$0xf]  ;;  %v3637_v29 = vld [vmem:[#allocation5 + $0x2e0] sm:$0xf0] }
  0x75   : > { %v3776_v16 = vor.u32 %v4492_v7, %v3773_v8  ;;  %v4476_v20 = vld [vmem:[#allocation5 + $0x32c] sm:$0xf]  ;;  %v3643_v30 = vld [vmem:[#allocation5 + $0x2a8] sm:$0xf]  ;;  %v3573_v41 = vld [vmem:[#allocation5 + $0x260] sm:$0xf0] }
  0x76   : > { %1292 = vmatpush.bf16.msrb.mxu0 %v3556_v13  ;;  %1305 = vmatpush.bf16.msrb.mxu1 %v3560_v14  ;;  %v3699_v13 = vld [vmem:[#allocation5 + $0x320] sm:$0xf]  ;;  %v3709_v21 = vld [vmem:[#allocation5 + $0x368] sm:$0xf0]  ;;  %v3579_v42 = vld [vmem:[#allocation5 + $0x228] sm:$0xf] }
  0x77   : > { %1318 = vmatpush.bf16.msrb.mxu2 %v3564_v15  ;;  %v4483_v14 = vld [vmem:[#allocation5 + $0x35c] sm:$0xf0]  ;;  %v4475_v15 = vld [vmem:[#allocation5 + $0x324] sm:$0xf]  ;;  %v3712_v28 = vor.u32 %v4476_v20, %v3709_v21  ;;  %v4460_v32 = vld [vmem:[#allocation5 + $0x2ac] sm:$0xf] }
  0x78   : > { %1331 = vmatpush.bf16.msrb.mxu3 %v3568_v19  ;;  %v4484_v19 = vld [vmem:[#allocation5 + $0x364] sm:$0xf0]  ;;  %v3700_v22 = vor.u32 %v4483_v14, %v3699_v13  ;;  %v3704_v23 = vor.u32 %v4475_v15, %v3701_v17  ;;  %v3645_v33 = vld [vmem:[#allocation5 + $0x2e8] sm:$0xf0]  ;;  %v4435_v51 = vld [vmem:[#allocation5 + $0x1dc] sm:$0xf0] }
  0x79   : > { %v3708_v24 = vor.u32 %v4484_v19, %v3707_v18  ;;  %v3648_v40 = vor.u32 %v4460_v32, %v3645_v33  ;;  %v4444_v44 = vld [vmem:[#allocation5 + $0x22c] sm:$0xf]  ;;  %v4427_v52 = vld [vmem:[#allocation5 + $0x1a4] sm:$0xf]  ;;  %v3515_v55 = vld [vmem:[#allocation5 + $0x1a8] sm:$0xf] }
  0x7a   : > { %1293 = vmatpush.bf16.msrb.mxu0 %v3492_v25  ;;  %1306 = vmatpush.bf16.msrb.mxu1 %v3496_v26  ;;  %v3635_v25 = vld [vmem:[#allocation5 + $0x2a0] sm:$0xf]  ;;  %v3581_v45 = vld [vmem:[#allocation5 + $0x268] sm:$0xf0]  ;;  %v4436_v56 = vld [vmem:[#allocation5 + $0x1e4] sm:$0xf0] }
  0x7b   : > { %1319 = vmatpush.bf16.msrb.mxu2 %v3500_v27  ;;  %v4467_v26 = vld [vmem:[#allocation5 + $0x2dc] sm:$0xf0]  ;;  %v4459_v27 = vld [vmem:[#allocation5 + $0x2a4] sm:$0xf]  ;;  %v4428_v57 = vld [vmem:[#allocation5 + $0x1ac] sm:$0xf]  ;;  %v3516_v63 = vor.u32 %v4436_v56, %v3515_v55 }
  0x7c   : > { %1332 = vmatpush.bf16.msrb.mxu3 %v3504_v31  ;;  %v4468_v31 = vld [vmem:[#allocation5 + $0x2e4] sm:$0xf0]  ;;  %v3636_v34 = vor.u32 %v4467_v26, %v3635_v25  ;;  %v3640_v35 = vor.u32 %v4459_v27, %v3637_v29  ;;  %v3443_v60 = vld [vmem:[#allocation5 + $0x120] sm:$0xf]  ;;  %v4411_v0 = vld [vmem:[#allocation5 + $0x124] sm:$0xf] }
  0x7d   : > { %v3644_v36 = vor.u32 %v4468_v31, %v3643_v30  ;;  %v4419_v61 = vld [vmem:[#allocation5 + $0x15c] sm:$0xf0]  ;;  %v3451_v2 = vld [vmem:[#allocation5 + $0x128] sm:$0xf]  ;;  %v3381_v13 = vld [vmem:[#allocation5 + $0xe0] sm:$0xf0] }
  0x7e   : > { %1294 = vmatpush.bf16.msrb.mxu0 %v3428_v37  ;;  %1307 = vmatpush.bf16.msrb.mxu1 %v3432_v38  ;;  %v3571_v37 = vld [vmem:[#allocation5 + $0x220] sm:$0xf]  ;;  %v4420_v4 = vld [vmem:[#allocation5 + $0x164] sm:$0xf0]  ;;  %v3444_v7 = vor.u32 %v4419_v61, %v3443_v60  ;;  %v4396_v17 = vld [vmem:[#allocation5 + $0xac] sm:$0xf] }
  0x7f   : > { %1320 = vmatpush.bf16.msrb.mxu2 %v3436_v39  ;;  %v4451_v38 = vld [vmem:[#allocation5 + $0x25c] sm:$0xf0]  ;;  %v4443_v39 = vld [vmem:[#allocation5 + $0x224] sm:$0xf]  ;;  %v3387_v15 = vld [vmem:[#allocation5 + $0xa8] sm:$0xf] }
  0x80   : > { %1333 = vmatpush.bf16.msrb.mxu3 %v3440_v43  ;;  %v4452_v43 = vld [vmem:[#allocation5 + $0x264] sm:$0xf0]  ;;  %v3572_v46 = vor.u32 %v4451_v38, %v3571_v37  ;;  %v3576_v47 = vor.u32 %v4443_v39, %v3573_v41  ;;  %v3379_v8 = vld [vmem:[#allocation5 + $0xa0] sm:$0xf]  ;;  %v3389_v18 = vld [vmem:[#allocation5 + $0xe8] sm:$0xf0] }
  0x81   : > { %v3580_v48 = vor.u32 %v4452_v43, %v3579_v42  ;;  %v3315_v20 = vld [vmem:[#allocation5 + $0x20] sm:$0xf]  ;;  %v3317_v25 = vld [vmem:[#allocation5 + $0x60] sm:$0xf0]  ;;  %v3323_v26 = vld [vmem:[#allocation5 + $0x28] sm:$0xf]  ;;  %v3392_v27 = vor.u32 %v4396_v17, %v3389_v18 }
  0x82   : > { %1295 = vmatpush.bf16.msrb.mxu0 %v3364_v49  ;;  %1308 = vmatpush.bf16.msrb.mxu1 %v3368_v53  ;;  %v3507_v49 = vld [vmem:[#allocation5 + $0x1a0] sm:$0xf]  ;;  %v3584_v53 = vor.u32 %v4444_v44, %v3581_v45  ;;  %v4380_v29 = vld [vmem:[#allocation5 + $0x2c] sm:$0xf]  ;;  %v3779_v31 = vld [vmem:[#allocation5 + $0x3b0] sm:$0xf] }
  0x83   : > { %1321 = vmatpush.bf16.msrb.mxu2 %v3372_v54  ;;  %v3509_v54 = vld [vmem:[#allocation5 + $0x1e0] sm:$0xf0]  ;;  %v3508_v59 = vor.u32 %v4435_v51, %v3507_v49  ;;  %v4387_v21 = vld [vmem:[#allocation5 + $0x5c] sm:$0xf0]  ;;  %v3325_v30 = vld [vmem:[#allocation5 + $0x68] sm:$0xf0] }
  0x84   : > { %1334 = vmatpush.bf16.msrb.mxu3 %v3376_v58  ;;  %v3517_v58 = vld [vmem:[#allocation5 + $0x1e8] sm:$0xf0]  ;;  %v3512_v62 = vor.u32 %v4427_v52, %v3509_v54  ;;  %v4501_v32 = vld [vmem:[#allocation5 + $0x3ec] sm:$0xf0]  ;;  %v4493_v33 = vld [vmem:[#allocation5 + $0x3b4] sm:$0xf]  ;;  %v3328_v42 = vor.u32 %v4380_v29, %v3325_v30 }
  0x85   : > { %v3520_v3 = vor.u32 %v4428_v57, %v3517_v58  ;;  %v4502_v37 = vld [vmem:[#allocation5 + $0x3f4] sm:$0xf0]  ;;  %v3789_v41 = vld [vmem:[#allocation5 + $0x3f8] sm:$0xf0]  ;;  %v3780_v43 = vor.u32 %v4501_v32, %v3779_v31  ;;  %v3717_v51 = vld [vmem:[#allocation5 + $0x370] sm:$0xf0] }
  0x86   : > { %1296 = vmatpush.bf16.msrb.mxu0 %v3300_v1  ;;  %1309 = vmatpush.bf16.msrb.mxu1 %v3304_v5  ;;  %v3445_v1 = vld [vmem:[#allocation5 + $0x160] sm:$0xf0]  ;;  %v4412_v5 = vld [vmem:[#allocation5 + $0x12c] sm:$0xf]  ;;  %v3723_v52 = vld [vmem:[#allocation5 + $0x338] sm:$0xf] }
  0x87   : > { %1322 = vmatpush.bf16.msrb.mxu2 %v3308_v6  ;;  %v3453_v6 = vld [vmem:[#allocation5 + $0x168] sm:$0xf0]  ;;  %v4478_v54 = vld [vmem:[#allocation5 + $0x33c] sm:$0xf]  ;;  %v4469_v60 = vld [vmem:[#allocation5 + $0x2ec] sm:$0xf0] }
  0x88   : > { %1335 = vmatpush.bf16.msrb.mxu3 %v3312_v9  ;;  %v3448_v9 = vor.u32 %v4411_v0, %v3445_v1  ;;  %v3456_v14 = vor.u32 %v4412_v5, %v3453_v6  ;;  %v3725_v55 = vld [vmem:[#allocation5 + $0x378] sm:$0xf0]  ;;  %v4461_v61 = vld [vmem:[#allocation5 + $0x2b4] sm:$0xf]  ;;  %v3659_v0 = vld [vmem:[#allocation5 + $0x2b8] sm:$0xf] }
  0x89   : > { %1297 = vmatmul.bf16.vlgmr.msrb.gmra.mxu0 %v5263_v50  ;;  %1310 = vmatmul.bf16.vlgmr.msrb.gmra.mxu1 %v5263_v50  ;;  %v4470_v1 = vld [vmem:[#allocation5 + $0x2f4] sm:$0xf0]  ;;  %v3459_v31 = vld [vmem:[#allocation5 + $0x130] sm:$0xf]  ;;  %s3280_s1 = sshll.u32 %s5240_s27, 3  ;;  %s4372_s26 = sshll.u32 %s5141_s16, 3 }
  0x8a   : > { %1341 = vmatpush.bf16.msra.mxu0 %v3764_v10  ;;  %1354 = vmatpush.bf16.msra.mxu1 %v3768_v11  ;;  %v3452_v10 = vor.u32 %v4420_v4, %v3451_v2  ;;  %v4403_v11 = vld [vmem:[#allocation5 + $0xdc] sm:$0xf0]  ;;  %v4462_v2 = vld [vmem:[#allocation5 + $0x2bc] sm:$0xf]  ;;  %v3660_v6 = vor.u32 %v4470_v1, %v3659_v0  ;;  %v4421_v32 = vld [vmem:[#allocation5 + $0x16c] sm:$0xf0]  ;;  %s3140_s29 = scalar_lea.hbm %s5469_s9, %s4372_s26 }
  0x8b   : > { %1367 = vmatpush.bf16.msra.mxu2 %v3772_v12  ;;  %1336 = vmatmul.bf16.vlgmr.msrb.gmra.mxu3 %v5263_v50  ;;  %v4395_v12 = vld [vmem:[#allocation5 + $0xa4] sm:$0xf]  ;;  %v3380_v19 = vor.u32 %v4403_v11, %v3379_v8  ;;  %v4453_v8 = vld [vmem:[#allocation5 + $0x26c] sm:$0xf0]  ;;  %v3589_v11 = vld [vmem:[#allocation5 + $0x270] sm:$0xf0] }
  0x8c   : > { %1380 = vmatpush.bf16.msra.mxu3 %v3776_v16  ;;  %1323 = vmatmul.bf16.vlgmr.msrb.gmra.mxu2 %v5263_v50  ;;  %v4404_v16 = vld [vmem:[#allocation5 + $0xe4] sm:$0xf0]  ;;  %v3341_v0 = vld [vmem:[#allocation5 + $0x78] sm:$0xf0]  ;;  %s430_s2 = scalar_lea.vmem [#allocation13], %s3280_s1  ;;  %s3144_s6 = sshll.u32 %s3140_s29, 4  ;;  %s3145_s6 = int_to_ptr.hbm [resolvable:$true] %s3144_s6 }
  0x8d   : > { %s3142_s3 = sshll.u32 %s430_s2, 4  ;;  %s3130_s17 = scalar_lea.sflag [#allocation4], %s5240_s27  ;;  %s3143_s3 = int_to_ptr.vmem [resolvable:$true] %s3142_s3 }
  0x8e   : > { %1342 = vmatpush.bf16.msra.mxu0 %v3700_v22  ;;  %1355 = vmatpush.bf16.msra.mxu1 %v3704_v23  ;;  %v3384_v22 = vor.u32 %v4395_v12, %v3381_v13  ;;  %v3388_v23 = vor.u32 %v4404_v16, %v3387_v15  ;;  %v3595_v12 = vld [vmem:[#allocation5 + $0x238] sm:$0xf]  ;;  %v3597_v15 = vld [vmem:[#allocation5 + $0x278] sm:$0xf0]  ;;  %s4990_s16 = sshra.s32 %s3145_s6, 4  ;;  %s4996_s18 = scalar_lea.hbm %s5469_s9, 16  ;;  %s4991_s16 = int_to_ptr.hbm [resolvable:$true] %s4990_s16 }
  0x8f   : > { %1368 = vmatpush.bf16.msra.mxu2 %v3708_v24  ;;  %v4379_v24 = vld [vmem:[#allocation5 + $0x24] sm:$0xf]  ;;  %v4454_v13 = vld [vmem:[#allocation5 + $0x274] sm:$0xf0]  ;;  %s4992_s23 = scalar_lea.hbm %s4991_s16, 8  ;;  %p4997_p12 = scmp.lt.s32.totalorder %s4991_s16, %s5469_s9 }
  0x90   : > { %1381 = vmatpush.bf16.msra.mxu3 %v3712_v28  ;;  %v4388_v28 = vld [vmem:[#allocation5 + $0x64] sm:$0xf0]  ;;  %v3320_v38 = vor.u32 %v4379_v24, %v3317_v25  ;;  %v3596_v18 = vor.u32 %v4454_v13, %v3595_v12  ;;  %v3531_v24 = vld [vmem:[#allocation5 + $0x1b8] sm:$0xf]  ;;  %v4525_v13 = vld [vmem:[#allocation8 + $0xb0] sm:$0xff]  ;;  %p4993_p1 = scmp.ne.s32.totalorder %s4991_s16, %s4992_s23  ;;  %p4998_p7 = scmp.lt.s32.totalorder %s4996_s18, %s4992_s23 }
  0x91   : > { %v3324_v39 = vor.u32 %v4388_v28, %v3323_v26  ;;  %v4438_v25 = vld [vmem:[#allocation5 + $0x1f4] sm:$0xf0]  ;;  %v4430_v26 = vld [vmem:[#allocation5 + $0x1bc] sm:$0xf] }
  0x92   : > { %1343 = vmatpush.bf16.msra.mxu0 %v3636_v34  ;;  %1356 = vmatpush.bf16.msra.mxu1 %v3640_v35  ;;  %v3316_v34 = vor.u32 %v4387_v21, %v3315_v20  ;;  %v3781_v35 = vld [vmem:[#allocation5 + $0x3f0] sm:$0xf0]  ;;  %v4437_v20 = vld [vmem:[#allocation5 + $0x1ec] sm:$0xf0]  ;;  %v3532_v30 = vor.u32 %v4438_v25, %v3531_v24  ;;  %v4516_v12 = vld [vmem:[#allocation8 + $0x68] sm:$0xff]  ;;  %p4994_p3 = pnand %p4993_p1, %p5209_p4  ;;  %p4999_p8 = por %p4998_p7, %p4997_p12 }
  0x93   : > { %1369 = vmatpush.bf16.msra.mxu2 %v3644_v36  ;;  %v3787_v36 = vld [vmem:[#allocation5 + $0x3b8] sm:$0xf]  ;;  %v3784_v44 = vor.u32 %v4493_v33, %v3781_v35  ;;  %v4429_v21 = vld [vmem:[#allocation5 + $0x1b4] sm:$0xf]  ;;  %v4522_v24 = vld [vmem:[#allocation8 + $0x98] sm:$0xff] }
  0x94   : > { %1382 = vmatpush.bf16.msra.mxu3 %v3648_v40  ;;  %v4494_v40 = vld [vmem:[#allocation5 + $0x3bc] sm:$0xf]  ;;  %v3788_v45 = vor.u32 %v4502_v37, %v3787_v36  ;;  %v4413_v33 = vld [vmem:[#allocation5 + $0x134] sm:$0xf]  ;;  %v3467_v36 = vld [vmem:[#allocation5 + $0x138] sm:$0xf]  ;;  %p4995_p5 = pneg %p4994_p3 }
  0x95   : > { %v3792_v49 = vor.u32 %v4494_v40, %v3789_v41  ;;  %v3461_v35 = vld [vmem:[#allocation5 + $0x170] sm:$0xf0]  ;;  %v4422_v37 = vld [vmem:[#allocation5 + $0x174] sm:$0xf0]  ;;  %v3460_v40 = vor.u32 %v4421_v32, %v3459_v31  ;;  %v4530_v25 = vld [vmem:[#allocation8 + $0xd8] sm:$0xff] }
  0x96   : > { %1344 = vmatpush.bf16.msra.mxu0 %v3572_v46  ;;  %1357 = vmatpush.bf16.msra.mxu1 %v3576_v47  ;;  %v3715_v46 = vld [vmem:[#allocation5 + $0x330] sm:$0xf]  ;;  %v3464_v41 = vor.u32 %v4413_v33, %v3461_v35  ;;  %v4542_v35 = vld [vmem:[#allocation8 + $0x138] sm:$0xff]  ;;  %p5000_p9 = pnand %p4999_p8, %p4995_p5 }
  0x97   : > { %1370 = vmatpush.bf16.msra.mxu2 %v3580_v48  ;;  %v4485_v47 = vld [vmem:[#allocation5 + $0x36c] sm:$0xf0]  ;;  %v4477_v48 = vld [vmem:[#allocation5 + $0x334] sm:$0xf] }
  0x98   : > { %1383 = vmatpush.bf16.msra.mxu3 %v3584_v53  ;;  %v4486_v53 = vld [vmem:[#allocation5 + $0x374] sm:$0xf0]  ;;  %v3716_v56 = vor.u32 %v4485_v47, %v3715_v46  ;;  %v3720_v57 = vor.u32 %v4477_v48, %v3717_v51  ;;  %v3397_v47 = vld [vmem:[#allocation5 + $0xf0] sm:$0xf0]  ;;  %v4398_v51 = vld [vmem:[#allocation5 + $0xbc] sm:$0xf] }
  0x99   : > { %v3724_v58 = vor.u32 %v4486_v53, %v3723_v52  ;;  %v3403_v48 = vld [vmem:[#allocation5 + $0xb8] sm:$0xf]  ;;  %v3405_v52 = vld [vmem:[#allocation5 + $0xf8] sm:$0xf0]  ;;  %v4503_v33 = vld [vmem:[#allocation8] sm:$0xff] }
  0x9a   : > { %1345 = vmatpush.bf16.msra.mxu0 %v3508_v59  ;;  %1358 = vmatpush.bf16.msra.mxu1 %v3512_v62  ;;  %v3651_v59 = vld [vmem:[#allocation5 + $0x2b0] sm:$0xf]  ;;  %v3728_v62 = vor.u32 %v4478_v54, %v3725_v55 }
  0x9b   : > { %1371 = vmatpush.bf16.msra.mxu2 %v3516_v63  ;;  %v3653_v63 = vld [vmem:[#allocation5 + $0x2f0] sm:$0xf0]  ;;  %v3652_v4 = vor.u32 %v4469_v60, %v3651_v59  ;;  %v3408_v59 = vor.u32 %v4398_v51, %v3405_v52 }
  0x9c   : > { %1384 = vmatpush.bf16.msra.mxu3 %v3520_v3  ;;  %v3661_v3 = vld [vmem:[#allocation5 + $0x2f8] sm:$0xf0]  ;;  %v3656_v5 = vor.u32 %v4461_v61, %v3653_v63  ;;  %v3333_v60 = vld [vmem:[#allocation5 + $0x70] sm:$0xf0]  ;;  %v3339_v61 = vld [vmem:[#allocation5 + $0x38] sm:$0xf] }
  0x9d   : > { %v4382_v63 = vld [vmem:[#allocation5 + $0x3c] sm:$0xf]  ;;  %v4527_v51 = vld [vmem:[#allocation8 + $0xc0] sm:$0xff] }
  0x9e   : > { %1346 = vmatpush.bf16.msra.mxu0 %v3444_v7  ;;  %1359 = vmatpush.bf16.msra.mxu1 %v3448_v9  ;;  %v3587_v7 = vld [vmem:[#allocation5 + $0x230] sm:$0xf]  ;;  %v4445_v9 = vld [vmem:[#allocation5 + $0x234] sm:$0xf] }
  0x9f   : > { %1372 = vmatpush.bf16.msra.mxu2 %v3452_v10  ;;  %v3664_v10 = vor.u32 %v4462_v2, %v3661_v3  ;;  %v3588_v16 = vor.u32 %v4453_v8, %v3587_v7  ;;  %v3592_v17 = vor.u32 %v4445_v9, %v3589_v11  ;;  %v4509_v7 = vld [vmem:[#allocation8 + $0x30] sm:$0xff]  ;;  %v4526_v9 = vld [vmem:[#allocation8 + $0xb8] sm:$0xff]  ;;  %v4508_v11 = vld [vmem:[#allocation8 + $0x28] sm:$0xff] }
  0xa0   : > { %1385 = vmatpush.bf16.msra.mxu3 %v3456_v14  ;;  %v4446_v14 = vld [vmem:[#allocation5 + $0x23c] sm:$0xf]  ;;  %v4517_v8 = vld [vmem:[#allocation8 + $0x70] sm:$0xff] }
  0xa2   : > { %1347 = vmatpush.bf16.msra.mxu0 %v3380_v19  ;;  %1360 = vmatpush.bf16.msra.mxu1 %v3384_v22  ;;  %v3523_v19 = vld [vmem:[#allocation5 + $0x1b0] sm:$0xf]  ;;  %v3600_v22 = vor.u32 %v4446_v14, %v3597_v15  ;;  %v4533_v14 = vld [vmem:[#allocation8 + $0xf0] sm:$0xff] }
  0xa3   : > { %1373 = vmatpush.bf16.msra.mxu2 %v3388_v23  ;;  %v3525_v23 = vld [vmem:[#allocation5 + $0x1f0] sm:$0xf0]  ;;  %v3524_v28 = vor.u32 %v4437_v20, %v3523_v19  ;;  %v4514_v19 = vld [vmem:[#allocation8 + $0x58] sm:$0xff] }
  0xa4   : > { %1386 = vmatpush.bf16.msra.mxu3 %v3392_v27  ;;  %v3533_v27 = vld [vmem:[#allocation5 + $0x1f8] sm:$0xf0]  ;;  %v3528_v29 = vor.u32 %v4429_v21, %v3525_v23  ;;  %v4507_v15 = vld [vmem:[#allocation8 + $0x20] sm:$0xff]  ;;  %v4513_v23 = vld [vmem:[#allocation8 + $0x50] sm:$0xff] }
  0xa5   : > { %v4523_v20 = vld [vmem:[#allocation8 + $0xa0] sm:$0xff] }
  0xa6   : > { %1348 = vmatpush.bf16.msra.mxu0 %v3316_v34  ;;  %1361 = vmatpush.bf16.msra.mxu1 %v3320_v38  ;;  %v3536_v34 = vor.u32 %v4430_v26, %v3533_v27  ;;  %v4414_v38 = vld [vmem:[#allocation5 + $0x13c] sm:$0xf]  ;;  %v4531_v21 = vld [vmem:[#allocation8 + $0xe0] sm:$0xff]  ;;  %v5281_v26 = vld [vmem:[#allocation7] sm:$0xff] }
  0xa7   : > { %1374 = vmatpush.bf16.msra.mxu2 %v3324_v39  ;;  %v3469_v39 = vld [vmem:[#allocation5 + $0x178] sm:$0xf0]  ;;  %v565_v31 = vperm.slane %v5281_v26, 0  ;;  %v566_v32 = vperm.slane %v5281_v26, 1 }
  0xa8   : > { %1387 = vmatpush.bf16.msra.mxu3 %v3328_v42  ;;  %v3468_v42 = vor.u32 %v4422_v37, %v3467_v36  ;;  %v3472_v46 = vor.u32 %v4414_v38, %v3469_v39  ;;  %v4504_v27 = vld [vmem:[#allocation8 + $0x8] sm:$0xff]  ;;  %v4550_v36 = vld [vmem:[#allocation8 + $0x178] sm:$0xff] }
  0xa9   : > { %1349 = vmatmul.bf16.vlgmr.msra.gmra.mxu0 %v5263_v50  ;;  %1362 = vmatmul.bf16.vlgmr.msra.gmra.mxu1 %v5263_v50  ;;  %v4520_v38 = vld [vmem:[#allocation8 + $0x88] sm:$0xff] }
  0xaa   : > { %1393 = vmatpush.bf16.msrb.mxu0 %v3780_v43  ;;  %1406 = vmatpush.bf16.msrb.mxu1 %v3784_v44  ;;  %v3395_v43 = vld [vmem:[#allocation5 + $0xb0] sm:$0xf]  ;;  %v4528_v39 = vld [vmem:[#allocation8 + $0xc8] sm:$0xff] }
  0xab   : > { %1419 = vmatpush.bf16.msrb.mxu2 %v3788_v45  ;;  %1388 = vmatmul.bf16.vlgmr.msra.gmra.mxu3 %v5263_v50  ;;  %v4405_v44 = vld [vmem:[#allocation5 + $0xec] sm:$0xf0]  ;;  %v4397_v45 = vld [vmem:[#allocation5 + $0xb4] sm:$0xf] }
  0xac   : > { %1432 = vmatpush.bf16.msrb.mxu3 %v3792_v49  ;;  %1375 = vmatmul.bf16.vlgmr.msra.gmra.mxu2 %v5263_v50  ;;  %v4406_v49 = vld [vmem:[#allocation5 + $0xf4] sm:$0xf0]  ;;  %v3396_v53 = vor.u32 %v4405_v44, %v3395_v43  ;;  %v3400_v54 = vor.u32 %v4397_v45, %v3397_v47  ;;  %v567_v43 = vperm.slane %v5281_v26, 2  ;;  %v568_v45 = vperm.slane %v5281_v26, 3  ;;  %v4549_v47 = vld [vmem:[#allocation8 + $0x170] sm:$0xff] }
  0xad   : > { %v3404_v55 = vor.u32 %v4406_v49, %v3403_v48  ;;  %v4519_v49 = vld [vmem:[#allocation8 + $0x80] sm:$0xff] }
  0xae   : > { %1394 = vmatpush.bf16.msrb.mxu0 %v3716_v56  ;;  %1407 = vmatpush.bf16.msrb.mxu1 %v3720_v57  ;;  %v3331_v56 = vld [vmem:[#allocation5 + $0x30] sm:$0xf] }
  0xaf   : > { %1420 = vmatpush.bf16.msrb.mxu2 %v3724_v58  ;;  %v4389_v57 = vld [vmem:[#allocation5 + $0x6c] sm:$0xf0]  ;;  %v4381_v58 = vld [vmem:[#allocation5 + $0x34] sm:$0xf] }
  0xb0   : > { %1433 = vmatpush.bf16.msrb.mxu3 %v3728_v62  ;;  %v4390_v62 = vld [vmem:[#allocation5 + $0x74] sm:$0xf0]  ;;  %v3332_v1 = vor.u32 %v4389_v57, %v3331_v56  ;;  %v3336_v2 = vor.u32 %v4381_v58, %v3333_v60 }
  0xb1   : > { %v3340_v3 = vor.u32 %v4390_v62, %v3339_v61  ;;  %v4540_v61 = vld [vmem:[#allocation8 + $0x128] sm:$0xff] }
  0xb2   : > { %1395 = vmatpush.bf16.msrb.mxu0 %v3652_v4  ;;  %1408 = vmatpush.bf16.msrb.mxu1 %v3656_v5  ;;  %v3344_v4 = vor.u32 %v4382_v63, %v3341_v0  ;;  %v4510_v5 = vld [vmem:[#allocation8 + $0x38] sm:$0xff]  ;;  %v4548_v62 = vld [vmem:[#allocation8 + $0x168] sm:$0xff] }
  0xb3   : > { %1421 = vmatpush.bf16.msrb.mxu2 %v3660_v6  ;;  %v4518_v6 = vld [vmem:[#allocation8 + $0x78] sm:$0xff] }
  0xb4   : > { %1434 = vmatpush.bf16.msrb.mxu3 %v3664_v10  ;;  %v4534_v10 = vld [vmem:[#allocation8 + $0xf8] sm:$0xff] }
  0xb6   : > { %1396 = vmatpush.bf16.msrb.mxu0 %v3588_v16  ;;  %1409 = vmatpush.bf16.msrb.mxu1 %v3592_v17  ;;  %v4515_v16 = vld [vmem:[#allocation8 + $0x60] sm:$0xff]  ;;  %v4524_v17 = vld [vmem:[#allocation8 + $0xa8] sm:$0xff] }
  0xb7   : > { %1422 = vmatpush.bf16.msrb.mxu2 %v3596_v18  ;;  %v4506_v18 = vld [vmem:[#allocation8 + $0x18] sm:$0xff] }
  0xb8   : > { %1435 = vmatpush.bf16.msrb.mxu3 %v3600_v22  ;;  %v4505_v22 = vld [vmem:[#allocation8 + $0x10] sm:$0xff] }
  0xba   : > { %1397 = vmatpush.bf16.msrb.mxu0 %v3524_v28  ;;  %1410 = vmatpush.bf16.msrb.mxu1 %v3528_v29  ;;  %v4512_v28 = vld [vmem:[#allocation8 + $0x48] sm:$0xff]  ;;  %v4521_v29 = vld [vmem:[#allocation8 + $0x90] sm:$0xff] }
  0xbb   : > { %1423 = vmatpush.bf16.msrb.mxu2 %v3532_v30  ;;  %v4529_v30 = vld [vmem:[#allocation8 + $0xd0] sm:$0xff] }
  0xbc   : > { %1436 = vmatpush.bf16.msrb.mxu3 %v3536_v34  ;;  %v4511_v34 = vld [vmem:[#allocation8 + $0x40] sm:$0xff] }
  0xbe   : > { %1398 = vmatpush.bf16.msrb.mxu0 %v3460_v40  ;;  %1411 = vmatpush.bf16.msrb.mxu1 %v3464_v41 }
  0xbf   : > { %1424 = vmatpush.bf16.msrb.mxu2 %v3468_v42 }
  0xc0   : > { %1437 = vmatpush.bf16.msrb.mxu3 %v3472_v46  ;;  %v4541_v46 = vld [vmem:[#allocation8 + $0x130] sm:$0xff] }
  0xc2   : > { %1399 = vmatpush.bf16.msrb.mxu0 %v3396_v53  ;;  %1412 = vmatpush.bf16.msrb.mxu1 %v3400_v54  ;;  %v4558_v54 = vld [vmem:[#allocation8 + $0x1b8] sm:$0xff] }
  0xc3   : > { %1425 = vmatpush.bf16.msrb.mxu2 %v3404_v55  ;;  %v4566_v55 = vld [vmem:[#allocation8 + $0x1f8] sm:$0xff] }
  0xc4   : > { %1438 = vmatpush.bf16.msrb.mxu3 %v3408_v59 }
  0xc6   : > { %1400 = vmatpush.bf16.msrb.mxu0 %v3332_v1  ;;  %1413 = vmatpush.bf16.msrb.mxu1 %v3336_v2 }
  0xc7   : > { %1426 = vmatpush.bf16.msrb.mxu2 %v3340_v3 }
  0xc8   : > { %1439 = vmatpush.bf16.msrb.mxu3 %v3344_v4 }
  0xc9   : > { %1401 = vmatmul.bf16.vlgmr.msrb.gmra.mxu0 %v5263_v50  ;;  %1414 = vmatmul.bf16.vlgmr.msrb.gmra.mxu1 %v5263_v50 }
  0xca   : > { %2141 = vmatpush.bf16.msra.mxu0 %v4510_v5  ;;  %2154 = vmatpush.bf16.msra.mxu1 %v4518_v6  ;;  %v4557_v5 = vld [vmem:[#allocation8 + $0x1b0] sm:$0xff] }
  0xcb   : > { %1427 = vmatmul.bf16.vlgmr.msrb.gmra.mxu2 %v5263_v50  ;;  %1440 = vmatmul.bf16.vlgmr.msrb.gmra.mxu3 %v5263_v50  ;;  %v4532_v50 = vld [vmem:[#allocation8 + $0xe8] sm:$0xff]  ;;  %v4565_v6 = vld [vmem:[#allocation8 + $0x1f0] sm:$0xff] }
  0xcc   : > { %2167 = vmatpush.bf16.msra.mxu2 %v4526_v9  ;;  %2180 = vmatpush.bf16.msra.mxu3 %v4534_v10 }
  0xce   : > { %2142 = vmatpush.bf16.msra.mxu0 %v4509_v7  ;;  %2155 = vmatpush.bf16.msra.mxu1 %v4517_v8 }
  0xd0   : > { %2168 = vmatpush.bf16.msra.mxu2 %v4525_v13  ;;  %2181 = vmatpush.bf16.msra.mxu3 %v4533_v14 }
  0xd2   : > { %2143 = vmatpush.bf16.msra.mxu0 %v4508_v11  ;;  %2156 = vmatpush.bf16.msra.mxu1 %v4516_v12  ;;  %v4539_v11 = vld [vmem:[#allocation8 + $0x120] sm:$0xff] }
  0xd3   : > { %v4547_v12 = vld [vmem:[#allocation8 + $0x160] sm:$0xff] }
  0xd4   : > { %2169 = vmatpush.bf16.msra.mxu2 %v4524_v17  ;;  %2182 = vmatpush.bf16.msra.mxu3 %v4532_v50  ;;  %v4556_v17 = vld [vmem:[#allocation8 + $0x1a8] sm:$0xff] }
  0xd5   : > { %v4564_v50 = vld [vmem:[#allocation8 + $0x1e8] sm:$0xff] }
  0xd6   : > { %2144 = vmatpush.bf16.msra.mxu0 %v4507_v15  ;;  %2157 = vmatpush.bf16.msra.mxu1 %v4515_v16 }
  0xd8   : > { %2170 = vmatpush.bf16.msra.mxu2 %v4523_v20  ;;  %2183 = vmatpush.bf16.msra.mxu3 %v4531_v21  ;;  %v4538_v21 = vld [vmem:[#allocation8 + $0x118] sm:$0xff] }
  0xda   : > { %2145 = vmatpush.bf16.msra.mxu0 %v4506_v18  ;;  %2158 = vmatpush.bf16.msra.mxu1 %v4514_v19 }
  0xdc   : > { %2171 = vmatpush.bf16.msra.mxu2 %v4522_v24  ;;  %2184 = vmatpush.bf16.msra.mxu3 %v4530_v25  ;;  %v4555_v25 = vld [vmem:[#allocation8 + $0x1a0] sm:$0xff] }
  0xde   : > { %2146 = vmatpush.bf16.msra.mxu0 %v4505_v22  ;;  %2159 = vmatpush.bf16.msra.mxu1 %v4513_v23  ;;  %v4546_v22 = vld [vmem:[#allocation8 + $0x158] sm:$0xff] }
  0xe0   : > { %2172 = vmatpush.bf16.msra.mxu2 %v4521_v29  ;;  %2185 = vmatpush.bf16.msra.mxu3 %v4529_v30  ;;  %v4537_v29 = vld [vmem:[#allocation8 + $0x110] sm:$0xff] }
  0xe1   : > { %v4545_v30 = vld [vmem:[#allocation8 + $0x150] sm:$0xff] }
  0xe2   : > { %2147 = vmatpush.bf16.msra.mxu0 %v4504_v27  ;;  %2160 = vmatpush.bf16.msra.mxu1 %v4512_v28  ;;  %v4563_v27 = vld [vmem:[#allocation8 + $0x1e0] sm:$0xff] }
  0xe4   : > { %2173 = vmatpush.bf16.msra.mxu2 %v4520_v38  ;;  %2186 = vmatpush.bf16.msra.mxu3 %v4528_v39  ;;  %v4536_v38 = vld [vmem:[#allocation8 + $0x108] sm:$0xff] }
  0xe5   : > { %v4544_v39 = vld [vmem:[#allocation8 + $0x148] sm:$0xff] }
  0xe6   : > { %v1246_v37 = vpop.f32.mrf.mxu0  ;;  %2148 = vmatpush.bf16.msra.mxu0 %v4503_v33  ;;  %2161 = vmatpush.bf16.msra.mxu1 %v4511_v34  ;;  %v1259_v41 = vpop.f32.mrf.mxu1  ;;  %v4554_v34 = vld [vmem:[#allocation8 + $0x198] sm:$0xff] }
  0xe7   : > { %v5285_v40 = vadd.f32 %v1246_v37, %v565_v31  ;;  %v5287_v42 = vadd.f32 %v1259_v41, %v566_v32 }
  0xe8   : > { %2174 = vmatpush.bf16.msra.mxu2 %v4519_v49  ;;  %2187 = vmatpush.bf16.msra.mxu3 %v4527_v51  ;;  %v569_v51 = vperm.slane %v5281_v26, 4 }
  0xe9   : > { %v1445_v44 = vmul.f32 %v5285_v40, %v5285_v40  ;;  %v1446_v48 = vmul.f32 %v5287_v42, %v5287_v42 }
  0xea   : > { %2193 = vmatpush.bf16.msrb.mxu0 %v4542_v35  ;;  %2206 = vmatpush.bf16.msrb.mxu1 %v4550_v36  ;;  %v4562_v35 = vld [vmem:[#allocation8 + $0x1d8] sm:$0xff] }
  0xeb   : > { %v1461_v52 = vmul.f32 %v1445_v44, %v5285_v40  ;;  %v1462_v56 = vmul.f32 %v1446_v48, %v5287_v42  ;;  %v4561_v48 = vld [vmem:[#allocation8 + $0x1d0] sm:$0xff] }
  0xec   : > { %2219 = vmatpush.bf16.msrb.mxu2 %v4558_v54  ;;  %2232 = vmatpush.bf16.msrb.mxu3 %v4566_v55  ;;  %v4535_v55 = vld [vmem:[#allocation8 + $0x100] sm:$0xff] }
  0xed   : > { %v1477_v59 = vmul.f32 0.044715, %v1461_v52  ;;  %v1478_v63 = vmul.f32 0.044715, %v1462_v56  ;;  %v4543_v56 = vld [vmem:[#allocation8 + $0x140] sm:$0xff] }
  0xee   : > { %2194 = vmatpush.bf16.msrb.mxu0 %v4541_v46  ;;  %2207 = vmatpush.bf16.msrb.mxu1 %v4549_v47  ;;  %v1285_v58 = vpop.f32.mrf.mxu3  ;;  %v1248_v1 = vpop.f32.mrf.mxu0  ;;  %v4553_v47 = vld [vmem:[#allocation8 + $0x190] sm:$0xff] }
  0xef   : > { %v1272_v53 = vpop.f32.mrf.mxu2  ;;  %v5299_v60 = vadd.f32 %v1285_v58, %v568_v45  ;;  %v1493_v2 = vadd.f32 %v1477_v59, %v5285_v40  ;;  %v1261_v4 = vpop.f32.mrf.mxu1  ;;  %v1494_v7 = vadd.f32 %v1478_v63, %v5287_v42  ;;  %v4560_v63 = vld [vmem:[#allocation8 + $0x1c8] sm:$0xff] }
  0xf0   : > { %v5297_v57 = vadd.f32 %v1272_v53, %v567_v43  ;;  %2220 = vmatpush.bf16.msrb.mxu2 %v4557_v5  ;;  %2233 = vmatpush.bf16.msrb.mxu3 %v4565_v6  ;;  %v570_v53 = vperm.slane %v5281_v26, 5  ;;  %v4590_v4 = vld [vmem:[#allocation8 + $0x278] sm:$0xff] }
  0xf1   : > { %v1448_v3 = vmul.f32 %v5299_v60, %v5299_v60  ;;  %v1509_v9 = vmul.f32 0.7978846, %v1493_v2  ;;  %v1510_v13 = vmul.f32 0.7978846, %v1494_v7 }
  0xf2   : > { %v1447_v0 = vmul.f32 %v5297_v57, %v5297_v57  ;;  %2195 = vmatpush.bf16.msrb.mxu0 %v4540_v61  ;;  %2208 = vmatpush.bf16.msrb.mxu1 %v4548_v62  ;;  %v4552_v62 = vld [vmem:[#allocation8 + $0x188] sm:$0xff] }
  0xf3   : > { %v1464_v10 = vmul.f32 %v1448_v3, %v5299_v60  ;;  %4757 = vtanh.f32 %v1509_v9  ;;  %v4582_v3 = vld [vmem:[#allocation8 + $0x238] sm:$0xff] }
  0xf4   : > { %v1463_v8 = vmul.f32 %v1447_v0, %v5297_v57  ;;  %4759 = vtanh.f32 %v1510_v13  ;;  %2221 = vmatpush.bf16.msrb.mxu2 %v4556_v17  ;;  %2234 = vmatpush.bf16.msrb.mxu3 %v4564_v50  ;;  %v572_v13 = vperm.slane %v5281_v26, 7  ;;  %v4581_v17 = vld [vmem:[#allocation8 + $0x230] sm:$0xff] }
  0xf5   : > { %v1480_v15 = vmul.f32 0.044715, %v1464_v10  ;;  %v4551_v10 = vld [vmem:[#allocation8 + $0x180] sm:$0xff]  ;;  %v4589_v50 = vld [vmem:[#allocation8 + $0x270] sm:$0xff] }
  0xf6   : > { %v1479_v14 = vmul.f32 0.044715, %v1463_v8  ;;  %2196 = vmatpush.bf16.msrb.mxu0 %v4539_v11  ;;  %2209 = vmatpush.bf16.msrb.mxu1 %v4547_v12  ;;  %v1287_v19 = vpop.f32.mrf.mxu3  ;;  %v4559_v11 = vld [vmem:[#allocation8 + $0x1c0] sm:$0xff] }
  0xf7   : > { %v1274_v16 = vpop.f32.mrf.mxu2  ;;  %v1496_v20 = vadd.f32 %v1480_v15, %v5299_v60 }
  0xf8   : > { %v1495_v18 = vadd.f32 %v1479_v14, %v5297_v57  ;;  %2222 = vmatpush.bf16.msrb.mxu2 %v4555_v25  ;;  %2235 = vmatpush.bf16.msrb.mxu3 %v4563_v27 }
  0xf9   : > { %v1512_v24 = vmul.f32 0.7978846, %v1496_v20  ;;  %v4758_v28 = vpop.eup %4757 }
  0xfa   : > { %v1511_v23 = vmul.f32 0.7978846, %v1495_v18  ;;  %2197 = vmatpush.bf16.msrb.mxu0 %v4538_v21  ;;  %2210 = vmatpush.bf16.msrb.mxu1 %v4546_v22  ;;  %v4760_v31 = vpop.eup %4759  ;;  %v1541_v32 = vadd.f32 1.0, %v4758_v28  ;;  %v4598_v22 = vld [vmem:[#allocation8 + $0x2b8] sm:$0xff] }
  0xfb   : > { %v1542_v33 = vadd.f32 1.0, %v4760_v31 }
  0xfc   : > { %4761 = vtanh.f32 %v1511_v23  ;;  %v1557_v36 = vmul.f32 0.5, %v1541_v32  ;;  %2223 = vmatpush.bf16.msrb.mxu2 %v4554_v34  ;;  %2236 = vmatpush.bf16.msrb.mxu3 %v4562_v35  ;;  %v4606_v23 = vld [vmem:[#allocation8 + $0x2f8] sm:$0xff]  ;;  %v4588_v34 = vld [vmem:[#allocation8 + $0x268] sm:$0xff] }
  0xfd   : > { %4763 = vtanh.f32 %v1512_v24  ;;  %v1558_v37 = vmul.f32 0.5, %v1542_v33  ;;  %v4580_v33 = vld [vmem:[#allocation8 + $0x228] sm:$0xff] }
  0xfe   : > { %2198 = vmatpush.bf16.msrb.mxu0 %v4537_v29  ;;  %2211 = vmatpush.bf16.msrb.mxu1 %v4545_v30  ;;  %v1573_v43 = vmul.f32 %v1557_v36, %v5285_v40 }
  0xff   : > { %v1574_v45 = vmul.f32 %v1558_v37, %v5287_v42  ;;  %v4597_v37 = vld [vmem:[#allocation8 + $0x2b0] sm:$0xff] }
 0x100   : > { %2224 = vmatpush.bf16.msrb.mxu2 %v4553_v47  ;;  %2237 = vmatpush.bf16.msrb.mxu3 %v4561_v48 }
 0x101   : > { %v1589_v54 = vpack.c.bf16 %v1574_v45, %v1573_v43  ;;  %v4579_v45 = vld [vmem:[#allocation8 + $0x220] sm:$0xff] }
 0x102   : > { %v4762_v41 = vpop.eup %4761  ;;  %2199 = vmatpush.bf16.msrb.mxu0 %v4536_v38  ;;  %2212 = vmatpush.bf16.msrb.mxu1 %v4544_v39  ;;  %v4605_v38 = vld [vmem:[#allocation8 + $0x2f0] sm:$0xff] }
 0x103   : > { %v4764_v44 = vpop.eup %4763  ;;  %v1543_v46 = vadd.f32 1.0, %v4762_v41  ;;  %v1733_v59 = vunpack.c.l.b16 %v1589_v54  ;;  %v1734_v61 = vunpack.c.h.b16 %v1589_v54 }
 0x104   : > { %v1544_v49 = vadd.f32 1.0, %v4764_v44  ;;  %2225 = vmatpush.bf16.msrb.mxu2 %v4552_v62  ;;  %2238 = vmatpush.bf16.msrb.mxu3 %v4560_v63 }
 0x105   : > { %v1559_v52 = vmul.f32 0.5, %v1543_v46  ;;  %v1741_v6 = vpack.c.b16 %v1733_v59, %v1733_v59  ;;  %v1742_v7 = vpack.c.b16 %v1734_v61, %v1734_v61  ;;  %v4587_v46 = vld [vmem:[#allocation8 + $0x260] sm:$0xff] }
 0x106   : > { %v1560_v40 = vmul.f32 0.5, %v1544_v49  ;;  %v1298_v42 = vpop.f32.mrf.mxu0  ;;  %2200 = vmatpush.bf16.msrb.mxu0 %v4535_v55  ;;  %2213 = vmatpush.bf16.msrb.mxu1 %v4543_v56  ;;  %v1311_v2 = vpop.f32.mrf.mxu1  ;;  %v4596_v49 = vld [vmem:[#allocation8 + $0x2a8] sm:$0xff]  ;;  %v4578_v56 = vld [vmem:[#allocation8 + $0x218] sm:$0xff]  ;;  %v4595_v59 = vld [vmem:[#allocation8 + $0x2a0] sm:$0xff] }
 0x107   : > { %v1575_v58 = vmul.f32 %v1559_v52, %v5297_v57  ;;  %v5317_v1 = vadd.f32 %v1298_v42, %v569_v51  ;;  %v5319_v5 = vadd.f32 %v1311_v2, %v570_v53  ;;  %2149 = vmatmul.bf16.vlgmr.msra.gmra.mxu0 %v1741_v6  ;;  %2162 = vmatmul.bf16.vlgmr.msra.gmra.mxu1 %v1742_v7  ;;  %v4604_v51 = vld [vmem:[#allocation8 + $0x2e8] sm:$0xff]  ;;  %v4603_v61 = vld [vmem:[#allocation8 + $0x2e0] sm:$0xff]  ;;  %v4594_v7 = vld [vmem:[#allocation8 + $0x298] sm:$0xff] }
 0x108   : > { %v1576_v0 = vmul.f32 %v1560_v40, %v5299_v60  ;;  %v571_v60 = vperm.slane %v5281_v26, 6  ;;  %2226 = vmatpush.bf16.msrb.mxu2 %v4551_v10  ;;  %2239 = vmatpush.bf16.msrb.mxu3 %v4559_v11  ;;  %v4586_v40 = vld [vmem:[#allocation8 + $0x258] sm:$0xff]  ;;  %v4576_v11 = vld [vmem:[#allocation8 + $0x208] sm:$0xff] }
 0x109   : > { %v1449_v57 = vmul.f32 %v5317_v1, %v5317_v1  ;;  %v1450_v9 = vmul.f32 %v5319_v5, %v5319_v5 }
 0x10a   : > { %v1590_v8 = vpack.c.bf16 %v1576_v0, %v1575_v58  ;;  %2846 = vmatpush.bf16.msra.mxu0 %v4582_v3  ;;  %2859 = vmatpush.bf16.msra.mxu1 %v4590_v4  ;;  %v4577_v3 = vld [vmem:[#allocation8 + $0x210] sm:$0xff] }
 0x10b   : > { %v1465_v12 = vmul.f32 %v1449_v57, %v5317_v1  ;;  %v1466_v16 = vmul.f32 %v1450_v9, %v5319_v5  ;;  %v4585_v4 = vld [vmem:[#allocation8 + $0x250] sm:$0xff]  ;;  %v4602_v57 = vld [vmem:[#allocation8 + $0x2d8] sm:$0xff] }
 0x10c   : > { %v1735_v14 = vunpack.c.l.b16 %v1590_v8  ;;  %v1736_v15 = vunpack.c.h.b16 %v1590_v8  ;;  %v5344_v9 = vld [vmem:[#allocation7 + $0x8] sm:$0xff] }
 0x10d   : > { %v1481_v18 = vmul.f32 0.044715, %v1465_v12  ;;  %v1482_v24 = vmul.f32 0.044715, %v1466_v16  ;;  %v4584_v12 = vld [vmem:[#allocation8 + $0x248] sm:$0xff] }
 0x10e   : > { %v1743_v20 = vpack.c.b16 %v1735_v14, %v1735_v14  ;;  %v1744_v21 = vpack.c.b16 %v1736_v15, %v1736_v15  ;;  %v1337_v26 = vpop.f32.mrf.mxu3  ;;  %v1300_v27 = vpop.f32.mrf.mxu0  ;;  %2847 = vmatpush.bf16.msra.mxu0 %v4581_v17  ;;  %2860 = vmatpush.bf16.msra.mxu1 %v4589_v50  ;;  %v573_v15 = vperm.slane %v5344_v9, 0  ;;  %v4593_v17 = vld [vmem:[#allocation8 + $0x290] sm:$0xff] }
 0x10f   : > { %v1324_v19 = vpop.f32.mrf.mxu2  ;;  %v1497_v28 = vadd.f32 %v1481_v18, %v5317_v1  ;;  %v5332_v29 = vadd.f32 %v1337_v26, %v572_v13  ;;  %v1313_v30 = vpop.f32.mrf.mxu1  ;;  %v1498_v31 = vadd.f32 %v1482_v24, %v5319_v5  ;;  %v4601_v18 = vld [vmem:[#allocation8 + $0x2d0] sm:$0xff]  ;;  %v4583_v24 = vld [vmem:[#allocation8 + $0x240] sm:$0xff] }
 0x110   : > { %v5329_v25 = vadd.f32 %v1324_v19, %v571_v60  ;;  %2175 = vmatmul.bf16.vlgmr.msra.gmra.mxu2 %v1743_v20  ;;  %2188 = vmatmul.bf16.vlgmr.msra.gmra.mxu3 %v1744_v21 }
 0x111   : > { %v1513_v35 = vmul.f32 0.7978846, %v1497_v28  ;;  %v1452_v36 = vmul.f32 %v5332_v29, %v5332_v29  ;;  %2872 = vmatpush.bf16.msra.mxu2 %v4598_v22  ;;  %2885 = vmatpush.bf16.msra.mxu3 %v4606_v23  ;;  %v1514_v39 = vmul.f32 0.7978846, %v1498_v31  ;;  %v4575_v23 = vld [vmem:[#allocation8 + $0x200] sm:$0xff] }
 0x112   : > { %v1451_v32 = vmul.f32 %v5329_v25, %v5329_v25  ;;  %2848 = vmatpush.bf16.msra.mxu0 %v4580_v33  ;;  %2861 = vmatpush.bf16.msra.mxu1 %v4588_v34  ;;  %v4622_v33 = vld [vmem:[#allocation8 + $0x378] sm:$0xff] }
 0x113   : > { %4765 = vtanh.f32 %v1513_v35  ;;  %v1468_v43 = vmul.f32 %v1452_v36, %v5332_v29  ;;  %v4592_v36 = vld [vmem:[#allocation8 + $0x288] sm:$0xff] }
 0x114   : > { %v1467_v41 = vmul.f32 %v1451_v32, %v5329_v25  ;;  %4767 = vtanh.f32 %v1514_v39  ;;  %v4614_v32 = vld [vmem:[#allocation8 + $0x338] sm:$0xff]  ;;  %v575_v39 = vperm.slane %v5344_v9, 2 }
 0x115   : > { %v1484_v47 = vmul.f32 0.044715, %v1468_v43  ;;  %2873 = vmatpush.bf16.msra.mxu2 %v4597_v37  ;;  %2886 = vmatpush.bf16.msra.mxu3 %v4605_v38  ;;  %v4600_v37 = vld [vmem:[#allocation8 + $0x2c8] sm:$0xff]  ;;  %v576_v43 = vperm.slane %v5344_v9, 3 }
 0x116   : > { %v1483_v44 = vmul.f32 0.044715, %v1467_v41  ;;  %v1339_v53 = vpop.f32.mrf.mxu3  ;;  %2849 = vmatpush.bf16.msra.mxu0 %v4579_v45  ;;  %2862 = vmatpush.bf16.msra.mxu1 %v4587_v46  ;;  %v4621_v45 = vld [vmem:[#allocation8 + $0x370] sm:$0xff] }
 0x117   : > { %v1326_v48 = vpop.f32.mrf.mxu2  ;;  %v1500_v54 = vadd.f32 %v1484_v47, %v5332_v29  ;;  %v4599_v53 = vld [vmem:[#allocation8 + $0x2c0] sm:$0xff] }
 0x118   : > { %v1499_v52 = vadd.f32 %v1483_v44, %v5329_v25  ;;  %v4613_v44 = vld [vmem:[#allocation8 + $0x330] sm:$0xff] }
 0x119   : > { %v4766_v58 = vpop.eup %4765  ;;  %v1516_v42 = vmul.f32 0.7978846, %v1500_v54  ;;  %2874 = vmatpush.bf16.msra.mxu2 %v4596_v49  ;;  %2887 = vmatpush.bf16.msra.mxu3 %v4604_v51 }
 0x11a   : > { %v1515_v55 = vmul.f32 0.7978846, %v1499_v52  ;;  %v4768_v62 = vpop.eup %4767  ;;  %v1545_v63 = vadd.f32 1.0, %v4766_v58  ;;  %2850 = vmatpush.bf16.msra.mxu0 %v4578_v56  ;;  %2863 = vmatpush.bf16.msra.mxu1 %v4586_v40  ;;  %v4591_v52 = vld [vmem:[#allocation8 + $0x280] sm:$0xff] }
 0x11b   : > { %v1546_v0 = vadd.f32 1.0, %v4768_v62 }
 0x11c   : > { %4769 = vtanh.f32 %v1515_v55  ;;  %v1561_v2 = vmul.f32 0.5, %v1545_v63 }
 0x11d   : > { %4771 = vtanh.f32 %v1516_v42  ;;  %v1562_v6 = vmul.f32 0.5, %v1546_v0  ;;  %2875 = vmatpush.bf16.msra.mxu2 %v4595_v59  ;;  %2888 = vmatpush.bf16.msra.mxu3 %v4603_v61  ;;  %v4630_v59 = vld [vmem:[#allocation8 + $0x3b8] sm:$0xff] }
 0x11e   : > { %v1577_v8 = vmul.f32 %v1561_v2, %v5317_v1  ;;  %2851 = vmatpush.bf16.msra.mxu0 %v4577_v3  ;;  %2864 = vmatpush.bf16.msra.mxu1 %v4585_v4  ;;  %v574_v1 = vperm.slane %v5344_v9, 1  ;;  %v4638_v61 = vld [vmem:[#allocation8 + $0x3f8] sm:$0xff]  ;;  %v4612_v2 = vld [vmem:[#allocation8 + $0x328] sm:$0xff] }
 0x11f   : > { %v1578_v60 = vmul.f32 %v1562_v6, %v5319_v5  ;;  %v4620_v3 = vld [vmem:[#allocation8 + $0x368] sm:$0xff] }
 0x121   : > { %v1591_v16 = vpack.c.bf16 %v1578_v60, %v1577_v8  ;;  %2876 = vmatpush.bf16.msra.mxu2 %v4594_v7  ;;  %2889 = vmatpush.bf16.msra.mxu3 %v4602_v57 }
 0x122   : > { %v4770_v10 = vpop.eup %4769  ;;  %2852 = vmatpush.bf16.msra.mxu0 %v4576_v11  ;;  %2865 = vmatpush.bf16.msra.mxu1 %v4584_v12  ;;  %v4637_v11 = vld [vmem:[#allocation8 + $0x3f0] sm:$0xff] }
 0x123   : > { %v4772_v13 = vpop.eup %4771  ;;  %v1547_v14 = vadd.f32 1.0, %v4770_v10  ;;  %v1737_v20 = vunpack.c.l.b16 %v1591_v16  ;;  %v1738_v5 = vunpack.c.h.b16 %v1591_v16  ;;  %v4629_v10 = vld [vmem:[#allocation8 + $0x3b0] sm:$0xff] }
 0x124   : > { %v1548_v50 = vadd.f32 1.0, %v4772_v13  ;;  %v4611_v13 = vld [vmem:[#allocation8 + $0x320] sm:$0xff] }
 0x125   : > { %v1563_v19 = vmul.f32 0.5, %v1547_v14  ;;  %v1745_v30 = vpack.c.b16 %v1737_v20, %v1737_v20  ;;  %v1746_v31 = vpack.c.b16 %v1738_v5, %v1738_v5  ;;  %2877 = vmatpush.bf16.msra.mxu2 %v4593_v17  ;;  %2890 = vmatpush.bf16.msra.mxu3 %v4601_v18  ;;  %v4619_v14 = vld [vmem:[#allocation8 + $0x360] sm:$0xff]  ;;  %v4628_v18 = vld [vmem:[#allocation8 + $0x3a8] sm:$0xff]  ;;  %v4610_v5 = vld [vmem:[#allocation8 + $0x318] sm:$0xff] }
 0x126   : > { %v1564_v21 = vmul.f32 0.5, %v1548_v50  ;;  %v1350_v22 = vpop.f32.mrf.mxu0  ;;  %v1363_v28 = vpop.f32.mrf.mxu1  ;;  %2853 = vmatpush.bf16.msra.mxu0 %v4575_v23  ;;  %2866 = vmatpush.bf16.msra.mxu1 %v4583_v24 }
 0x127   : > { %v1579_v26 = vmul.f32 %v1563_v19, %v5329_v25  ;;  %v5350_v27 = vadd.f32 %v1350_v22, %v573_v15  ;;  %v5353_v35 = vadd.f32 %v1363_v28, %v574_v1  ;;  %2201 = vmatmul.bf16.vlgmr.msrb.gmra.mxu0 %v1745_v30  ;;  %2214 = vmatmul.bf16.vlgmr.msrb.gmra.mxu1 %v1746_v31  ;;  %v4636_v19 = vld [vmem:[#allocation8 + $0x3e8] sm:$0xff]  ;;  %v4627_v30 = vld [vmem:[#allocation8 + $0x3a0] sm:$0xff] }
 0x128   : > { %v1580_v34 = vmul.f32 %v1564_v21, %v5332_v29  ;;  %v4618_v21 = vld [vmem:[#allocation8 + $0x358] sm:$0xff]  ;;  %v4635_v31 = vld [vmem:[#allocation8 + $0x3e0] sm:$0xff] }
 0x129   : > { %v1453_v38 = vmul.f32 %v5350_v27, %v5350_v27  ;;  %v1454_v25 = vmul.f32 %v5353_v35, %v5353_v35  ;;  %2878 = vmatpush.bf16.msra.mxu2 %v4592_v36  ;;  %2891 = vmatpush.bf16.msra.mxu3 %v4600_v37 }
 0x12a   : > { %v1592_v41 = vpack.c.bf16 %v1580_v34, %v1579_v26  ;;  %2898 = vmatpush.bf16.msrb.mxu0 %v4614_v32  ;;  %2911 = vmatpush.bf16.msrb.mxu1 %v4622_v33  ;;  %v4609_v33 = vld [vmem:[#allocation8 + $0x310] sm:$0xff] }
 0x12b   : > { %v1469_v29 = vmul.f32 %v1453_v38, %v5350_v27  ;;  %v1470_v46 = vmul.f32 %v1454_v25, %v5353_v35  ;;  %v4617_v34 = vld [vmem:[#allocation8 + $0x350] sm:$0xff]  ;;  %v4626_v25 = vld [vmem:[#allocation8 + $0x398] sm:$0xff] }
 0x12c   : > { %v1739_v47 = vunpack.c.l.b16 %v1592_v41  ;;  %v1740_v48 = vunpack.c.h.b16 %v1592_v41 }
 0x12d   : > { %v1485_v49 = vmul.f32 0.044715, %v1469_v29  ;;  %v1486_v54 = vmul.f32 0.044715, %v1470_v46  ;;  %2879 = vmatpush.bf16.msra.mxu2 %v4591_v52  ;;  %2892 = vmatpush.bf16.msra.mxu3 %v4599_v53  ;;  %v4608_v29 = vld [vmem:[#allocation8 + $0x308] sm:$0xff]  ;;  %v4633_v52 = vld [vmem:[#allocation8 + $0x3d0] sm:$0xff] }
 0x12e   : > { %v1389_v56 = vpop.f32.mrf.mxu3  ;;  %v1747_v40 = vpack.c.b16 %v1739_v47, %v1739_v47  ;;  %v1748_v58 = vpack.c.b16 %v1740_v48, %v1740_v48  ;;  %v1352_v42 = vpop.f32.mrf.mxu0  ;;  %2899 = vmatpush.bf16.msrb.mxu0 %v4613_v44  ;;  %2912 = vmatpush.bf16.msrb.mxu1 %v4621_v45  ;;  %v577_v45 = vperm.slane %v5344_v9, 4  ;;  %v578_v48 = vperm.slane %v5344_v9, 5 }
 0x12f   : > { %v1376_v51 = vpop.f32.mrf.mxu2  ;;  %v1501_v62 = vadd.f32 %v1485_v49, %v5350_v27  ;;  %v5366_v63 = vadd.f32 %v1389_v56, %v576_v43  ;;  %v1365_v0 = vpop.f32.mrf.mxu1  ;;  %v1502_v4 = vadd.f32 %v1486_v54, %v5353_v35  ;;  %v4616_v43 = vld [vmem:[#allocation8 + $0x348] sm:$0xff] }
 0x130   : > { %v5363_v55 = vadd.f32 %v1376_v51, %v575_v39  ;;  %2227 = vmatmul.bf16.vlgmr.msrb.gmra.mxu2 %v1747_v40  ;;  %2240 = vmatmul.bf16.vlgmr.msrb.gmra.mxu3 %v1748_v58  ;;  %v4634_v39 = vld [vmem:[#allocation8 + $0x3d8] sm:$0xff] }
 0x131   : > { %v1517_v7 = vmul.f32 0.7978846, %v1501_v62  ;;  %v1456_v57 = vmul.f32 %v5366_v63, %v5366_v63  ;;  %v1518_v8 = vmul.f32 0.7978846, %v1502_v4  ;;  %2924 = vmatpush.bf16.msrb.mxu2 %v4630_v59  ;;  %2937 = vmatpush.bf16.msrb.mxu3 %v4638_v61  ;;  %v4607_v59 = vld [vmem:[#allocation8 + $0x300] sm:$0xff] }
 0x132   : > { %v1455_v6 = vmul.f32 %v5363_v55, %v5363_v55  ;;  %2900 = vmatpush.bf16.msrb.mxu0 %v4612_v2  ;;  %2913 = vmatpush.bf16.msrb.mxu1 %v4620_v3  ;;  %v4615_v61 = vld [vmem:[#allocation8 + $0x340] sm:$0xff] }
 0x133   : > { %4773 = vtanh.f32 %v1517_v7  ;;  %v1472_v12 = vmul.f32 %v1456_v57, %v5366_v63  ;;  %v4624_v7 = vld [vmem:[#allocation8 + $0x388] sm:$0xff] }
 0x134   : > { %v1471_v60 = vmul.f32 %v1455_v6, %v5363_v55  ;;  %4775 = vtanh.f32 %v1518_v8  ;;  %v4632_v57 = vld [vmem:[#allocation8 + $0x3c8] sm:$0xff] }
 0x135   : > { %v1488_v16 = vmul.f32 0.044715, %v1472_v12  ;;  %2925 = vmatpush.bf16.msrb.mxu2 %v4629_v10  ;;  %2938 = vmatpush.bf16.msrb.mxu3 %v4637_v11  ;;  %v580_v10 = vperm.slane %v5344_v9, 7 }
 0x136   : > { %v1487_v15 = vmul.f32 0.044715, %v1471_v60  ;;  %v1391_v1 = vpop.f32.mrf.mxu3  ;;  %2901 = vmatpush.bf16.msrb.mxu0 %v4611_v13  ;;  %2914 = vmatpush.bf16.msrb.mxu1 %v4619_v14 }
 0x137   : > { %v1378_v17 = vpop.f32.mrf.mxu2  ;;  %v1504_v20 = vadd.f32 %v1488_v16, %v5366_v63 }
 0x138   : > { %v1503_v50 = vadd.f32 %v1487_v15, %v5363_v55 }
 0x139   : > { %v4774_v23 = vpop.eup %4773  ;;  %v1520_v24 = vmul.f32 0.7978846, %v1504_v20  ;;  %2926 = vmatpush.bf16.msrb.mxu2 %v4628_v18  ;;  %2939 = vmatpush.bf16.msrb.mxu3 %v4636_v19  ;;  %v4623_v18 = vld [vmem:[#allocation8 + $0x380] sm:$0xff] }
 0x13a   : > { %v1519_v22 = vmul.f32 0.7978846, %v1503_v50  ;;  %v4776_v26 = vpop.eup %4775  ;;  %v1549_v28 = vadd.f32 1.0, %v4774_v23  ;;  %2902 = vmatpush.bf16.msrb.mxu0 %v4610_v5  ;;  %2915 = vmatpush.bf16.msrb.mxu1 %v4618_v21  ;;  %v4631_v19 = vld [vmem:[#allocation8 + $0x3c0] sm:$0xff] }
 0x13b   : > { %v1550_v32 = vadd.f32 1.0, %v4776_v26 }
 0x13c   : > { %4777 = vtanh.f32 %v1519_v22  ;;  %v1565_v36 = vmul.f32 0.5, %v1549_v28 }
 0x13d   : > { %4779 = vtanh.f32 %v1520_v24  ;;  %v1566_v37 = vmul.f32 0.5, %v1550_v32  ;;  %2927 = vmatpush.bf16.msrb.mxu2 %v4627_v30  ;;  %2940 = vmatpush.bf16.msrb.mxu3 %v4635_v31 }
 0x13e   : > { %v1581_v38 = vmul.f32 %v1565_v36, %v5350_v27  ;;  %2903 = vmatpush.bf16.msrb.mxu0 %v4609_v33  ;;  %2916 = vmatpush.bf16.msrb.mxu1 %v4617_v34  ;;  %v4625_v27 = vld [vmem:[#allocation8 + $0x390] sm:$0xff] }
 0x13f   : > { %v1582_v41 = vmul.f32 %v1566_v37, %v5353_v35 }
 0x141   : > { %v1593_v49 = vpack.c.bf16 %v1582_v41, %v1581_v38  ;;  %2928 = vmatpush.bf16.msrb.mxu2 %v4626_v25  ;;  %2941 = vmatpush.bf16.msrb.mxu3 %v4634_v39 }
 0x142   : > { %v4778_v44 = vpop.eup %4777  ;;  %2904 = vmatpush.bf16.msrb.mxu0 %v4608_v29  ;;  %2917 = vmatpush.bf16.msrb.mxu1 %v4616_v43 }
 0x143   : > { %v4780_v46 = vpop.eup %4779  ;;  %v1551_v47 = vadd.f32 1.0, %v4778_v44  ;;  %v2438_v35 = vunpack.c.l.b16 %v1593_v49  ;;  %v2439_v56 = vunpack.c.h.b16 %v1593_v49 }
 0x144   : > { %v1552_v51 = vadd.f32 1.0, %v4780_v46 }
 0x145   : > { %v1567_v53 = vmul.f32 0.5, %v1551_v47  ;;  %v2446_v2 = vpack.c.b16 %v2438_v35, %v2438_v35  ;;  %v2447_v3 = vpack.c.b16 %v2439_v56, %v2439_v56  ;;  %2929 = vmatpush.bf16.msrb.mxu2 %v4625_v27  ;;  %2942 = vmatpush.bf16.msrb.mxu3 %v4633_v52 }
 0x146   : > { %v1402_v54 = vpop.f32.mrf.mxu0  ;;  %v1568_v40 = vmul.f32 0.5, %v1552_v51  ;;  %v1415_v42 = vpop.f32.mrf.mxu1  ;;  %2905 = vmatpush.bf16.msrb.mxu0 %v4607_v59  ;;  %2918 = vmatpush.bf16.msrb.mxu1 %v4615_v61 }
 0x147   : > { %v5381_v58 = vadd.f32 %v1402_v54, %v577_v45  ;;  %v1583_v62 = vmul.f32 %v1567_v53, %v5363_v55  ;;  %v5384_v0 = vadd.f32 %v1415_v42, %v578_v48  ;;  %2854 = vmatmul.bf16.vlgmr.msra.gmra.mxu0 %v2446_v2  ;;  %2867 = vmatmul.bf16.vlgmr.msra.gmra.mxu1 %v2447_v3  ;;  %v579_v55 = vperm.slane %v5344_v9, 6 }
 0x148   : > { %v1584_v4 = vmul.f32 %v1568_v40, %v5366_v63 }
 0x149   : > { %v1457_v6 = vmul.f32 %v5381_v58, %v5381_v58  ;;  %v1458_v8 = vmul.f32 %v5384_v0, %v5384_v0  ;;  %2930 = vmatpush.bf16.msrb.mxu2 %v4624_v7  ;;  %2943 = vmatpush.bf16.msrb.mxu3 %v4632_v57 }
 0x14a   : > { %v1594_v11 = vpack.c.bf16 %v1584_v4, %v1583_v62 }
 0x14b   : > { %v1473_v60 = vmul.f32 %v1457_v6, %v5381_v58  ;;  %v1474_v63 = vmul.f32 %v1458_v8, %v5384_v0 }
 0x14c   : > { %v2440_v14 = vunpack.c.l.b16 %v1594_v11  ;;  %v2441_v15 = vunpack.c.h.b16 %v1594_v11  ;;  %v4750_v11 = vld [vmem:[%s5464_s4] ss:$0 sm:$0xff] }
 0x14d   : > { %v1489_v12 = vmul.f32 0.044715, %v1473_v60  ;;  %v1490_v16 = vmul.f32 0.044715, %v1474_v63  ;;  %2931 = vmatpush.bf16.msrb.mxu2 %v4623_v18  ;;  %2944 = vmatpush.bf16.msrb.mxu3 %v4631_v19 }
 0x14e   : > { %v1428_v13 = vpop.f32.mrf.mxu2  ;;  %v1441_v50 = vpop.f32.mrf.mxu3  ;;  %v2448_v21 = vpack.c.b16 %v2440_v14, %v2440_v14  ;;  %v2449_v22 = vpack.c.b16 %v2441_v15, %v2441_v15 }
 0x14f   : > { %v1429_v17 = vadd.f32 %v1428_v13, %v579_v55  ;;  %v1404_v1 = vpop.f32.mrf.mxu0  ;;  %v1505_v20 = vadd.f32 %v1489_v12, %v5381_v58  ;;  %v1442_v9 = vadd.f32 %v1441_v50, %v580_v10  ;;  %v1417_v5 = vpop.f32.mrf.mxu1  ;;  %v1506_v23 = vadd.f32 %v1490_v16, %v5384_v0 }
 0x150   : > { %2880 = vmatmul.bf16.vlgmr.msra.gmra.mxu2 %v2448_v21  ;;  %2893 = vmatmul.bf16.vlgmr.msra.gmra.mxu3 %v2449_v22  ;;  %v4795_v22 = vld [vmem:[%s5244_s25] sm:$0xf] }
 0x151   : > { %v1459_v24 = vmul.f32 %v1429_v17, %v1429_v17  ;;  %v1521_v26 = vmul.f32 0.7978846, %v1505_v20  ;;  %v1460_v28 = vmul.f32 %v1442_v9, %v1442_v9  ;;  %v1522_v30 = vmul.f32 0.7978846, %v1506_v23 }
 0x152   : > { %v432_v23 = vunpack.c.l.bf16 %v4795_v22 }
 0x153   : > { %v1475_v31 = vmul.f32 %v1459_v24, %v1429_v17  ;;  %4781 = vtanh.f32 %v1521_v26  ;;  %v1476_v32 = vmul.f32 %v1460_v28, %v1442_v9 }
 0x154   : > { %4783 = vtanh.f32 %v1522_v30 }
 0x155   : > { %v1491_v33 = vmul.f32 0.044715, %v1475_v31  ;;  %v1492_v34 = vmul.f32 0.044715, %v1476_v32 }
 0x156   : > { %v1430_v36 = vpop.f32.mrf.mxu2  ;;  %v1443_v38 = vpop.f32.mrf.mxu3 }
 0x157   : > { %v1507_v37 = vadd.f32 %v1491_v33, %v1429_v17  ;;  %v1508_v25 = vadd.f32 %v1492_v34, %v1442_v9  ;;  %v4751_v38 = vld [vmem:[%s5464_s4 + $0x1] ss:$0 sm:$0xff] }
 0x159   : > { %v1523_v39 = vmul.f32 0.7978846, %v1507_v37  ;;  %v4782_v41 = vpop.eup %4781  ;;  %v1524_v29 = vmul.f32 0.7978846, %v1508_v25 }
 0x15a   : > { %v4784_v43 = vpop.eup %4783  ;;  %v1553_v44 = vadd.f32 1.0, %v4782_v41 }
 0x15b   : > { %4785 = vtanh.f32 %v1523_v39  ;;  %v1554_v45 = vadd.f32 1.0, %v4784_v43 }
 0x15c   : > { %4787 = vtanh.f32 %v1524_v29  ;;  %v1569_v46 = vmul.f32 0.5, %v1553_v44 }
 0x15d   : > { %v1570_v47 = vmul.f32 0.5, %v1554_v45 }
 0x15e   : > { %v1585_v48 = vmul.f32 %v1569_v46, %v5381_v58 }
 0x15f   : > { %v1586_v49 = vmul.f32 %v1570_v47, %v5384_v0 }
 0x161   : > { %v4786_v51 = vpop.eup %4785  ;;  %v1595_v53 = vpack.c.bf16 %v1586_v49, %v1585_v48 }
 0x162   : > { %v4788_v27 = vpop.eup %4787  ;;  %v1555_v52 = vadd.f32 1.0, %v4786_v51 }
 0x163   : > { %v1556_v54 = vadd.f32 1.0, %v4788_v27  ;;  %v2442_v56 = vunpack.c.l.b16 %v1595_v53  ;;  %v2443_v40 = vunpack.c.h.b16 %v1595_v53 }
 0x164   : > { %v1571_v35 = vmul.f32 0.5, %v1555_v52 }
 0x165   : > { %v1572_v42 = vmul.f32 0.5, %v1556_v54  ;;  %v2450_v61 = vpack.c.b16 %v2442_v56, %v2442_v56  ;;  %v2451_v62 = vpack.c.b16 %v2443_v40, %v2443_v40 }
 0x166   : > { %v1587_v59 = vmul.f32 %v1571_v35, %v1429_v17 }
 0x167   : > { %v1588_v2 = vmul.f32 %v1572_v42, %v1442_v9  ;;  %2906 = vmatmul.bf16.vlgmr.msrb.gmra.mxu0 %v2450_v61  ;;  %2919 = vmatmul.bf16.vlgmr.msrb.gmra.mxu1 %v2451_v62  ;;  %v5066_v42 = vmov 128.0  }
 0x168   : > { %4789 = vrcp.f32 %v5066_v42 }
 0x169   : > { %v1596_v3 = vpack.c.bf16 %v1588_v2, %v1587_v59 }
 0x16b   : > { %v2444_v4 = vunpack.c.l.b16 %v1596_v3  ;;  %v2445_v58 = vunpack.c.h.b16 %v1596_v3 }
 0x16d   : > { %v2452_v6 = vpack.c.b16 %v2444_v4, %v2444_v4  ;;  %v2453_v0 = vpack.c.b16 %v2445_v58, %v2445_v58 }
 0x16e   : > { %v4790_v59 = vpop.eup %4789 }
 0x16f   : > { %2932 = vmatmul.bf16.vlgmr.msrb.gmra.mxu2 %v2452_v6  ;;  %2945 = vmatmul.bf16.vlgmr.msrb.gmra.mxu3 %v2453_v0  ;;  %v2249_v61 = vmul.f32 128.0, %v4790_v59  ;;  %vm2253_vm0 = vweird.f32 %v4790_v59 }
 0x171   : > { %v2250_v62 = vsub.f32 1.0, %v2249_v61 }
 0x173   : > { %v2251_v2 = vmul.f32 %v4790_v59, %v2250_v62 }
 0x175   : > { %v2252_v3 = vadd.f32 %v4790_v59, %v2251_v2 }
 0x177   : > { %v5406_v4 = vsel %vm2253_vm0, %v4790_v59, %v2252_v3  ;;  %v4756_v59 = vld [vmem:[%s5468_s8] ss:$0 sm:$0xff] }
 0x184   : > { %v2150_v7 = vpop.f32.mrf.mxu0  ;;  %v2163_v57 = vpop.f32.mrf.mxu1 }
 0x185   : > { %v2151_v13 = vadd.f32 %v4750_v11, %v2150_v7  ;;  %v4573_v11 = vld [vmem:[#allocation11 + $0x30] sm:$0xff] }
 0x187   : > { %v2164_v14 = vadd.f32 %v2163_v57, %v2151_v13  ;;  %v4574_v57 = vld [vmem:[#allocation11 + $0x38] sm:$0xff] }
 0x188   : > { %3110 = vmatpush.bf16.msra.mxu1 %v4574_v57  ;;  %v4570_v13 = vld [vmem:[#allocation11 + $0x18] sm:$0xff] }
 0x18c   : > { %v2152_v8 = vpop.f32.mrf.mxu0  ;;  %v2165_v55 = vpop.f32.mrf.mxu1  ;;  %3111 = vmatpush.bf16.msra.mxu1 %v4573_v11 }
 0x193   : > { %v2176_v60 = vpop.f32.mrf.mxu2  ;;  %v2189_v10 = vpop.f32.mrf.mxu3 }
 0x194   : > { %v2177_v17 = vadd.f32 %v2176_v60, %v2164_v14  ;;  %v4569_v14 = vld [vmem:[#allocation11 + $0x10] sm:$0xff] }
 0x196   : > { %v2190_v50 = vadd.f32 %v2189_v10, %v2177_v17  ;;  %v4646_v17 = vld [vmem:[#allocation11 + $0x78] sm:$0xff] }
 0x197   : > { %3049 = vmatpush.bf16.msra.mxu0 %v4646_v17 }
 0x19b   : > { %v2178_v63 = vpop.f32.mrf.mxu2  ;;  %v2191_v12 = vpop.f32.mrf.mxu3 }
 0x19c   : > { %v4572_v63 = vld [vmem:[#allocation11 + $0x28] sm:$0xff]  ;;  %v4571_v12 = vld [vmem:[#allocation11 + $0x20] sm:$0xff] }
 0x19d   : > { %3112 = vmatpush.bf16.msra.mxu1 %v4572_v63 }
 0x1a1   : > { %3113 = vmatpush.bf16.msra.mxu1 %v4571_v12 }
 0x1a4   : > { %v2202_v15 = vpop.f32.mrf.mxu0  ;;  %v2215_v16 = vpop.f32.mrf.mxu1 }
 0x1a5   : > { %v2203_v1 = vadd.f32 %v2202_v15, %v2190_v50  ;;  %3114 = vmatpush.bf16.msra.mxu1 %v4570_v13  ;;  %v4568_v15 = vld [vmem:[#allocation11 + $0x8] sm:$0xff] }
 0x1a7   : > { %v2216_v20 = vadd.f32 %v2215_v16, %v2203_v1  ;;  %v4567_v16 = vld [vmem:[#allocation11] sm:$0xff] }
 0x1a9   : > { %3115 = vmatpush.bf16.msra.mxu1 %v4569_v14 }
 0x1ac   : > { %v2204_v18 = vpop.f32.mrf.mxu0  ;;  %v2217_v19 = vpop.f32.mrf.mxu1 }
 0x1ad   : > { %3116 = vmatpush.bf16.msra.mxu1 %v4568_v15 }
 0x1b1   : > { %3117 = vmatpush.bf16.msra.mxu1 %v4567_v16 }
 0x1b3   : > { %v2228_v9 = vpop.f32.mrf.mxu2  ;;  %v2241_v5 = vpop.f32.mrf.mxu3 }
 0x1b4   : > { %v2229_v21 = vadd.f32 %v2228_v9, %v2216_v20 }
 0x1b6   : > { %v2242_v24 = vadd.f32 %v2241_v5, %v2229_v21 }
 0x1b8   : > { %v2245_v26 = vadd.f32 %v2242_v24, %v432_v23 }
 0x1ba   : > { %2246 = vadd.xlane.f32.xlu0 %v2245_v26 }
 0x1bb   : > { %v2230_v28 = vpop.f32.mrf.mxu2  ;;  %v2243_v30 = vpop.f32.mrf.mxu3 }
 0x1bc   : > { %v4753_v28 = vld [vmem:[#allocation10] ss:$0 sm:$0xff] }
 0x1c4   : > { %v2855_v31 = vpop.f32.mrf.mxu0  ;;  %v2868_v32 = vpop.f32.mrf.mxu1 }
 0x1c5   : > { %v2856_v41 = vadd.f32 %v4751_v38, %v2855_v31  ;;  %v4641_v38 = vld [vmem:[#allocation11 + $0x50] sm:$0xff] }
 0x1c7   : > { %v2869_v29 = vadd.f32 %v2868_v32, %v2856_v41 }
 0x1cc   : > { %v2857_v33 = vpop.f32.mrf.mxu0  ;;  %v2870_v34 = vpop.f32.mrf.mxu1 }
 0x1cd   : > { %v4645_v33 = vld [vmem:[#allocation11 + $0x70] sm:$0xff]  ;;  %v4644_v34 = vld [vmem:[#allocation11 + $0x68] sm:$0xff] }
 0x1ce   : > { %3050 = vmatpush.bf16.msra.mxu0 %v4645_v33 }
 0x1d2   : > { %3051 = vmatpush.bf16.msra.mxu0 %v4644_v34 }
 0x1d3   : > { %v2881_v36 = vpop.f32.mrf.mxu2  ;;  %v2894_v37 = vpop.f32.mrf.mxu3 }
 0x1d4   : > { %v2882_v45 = vadd.f32 %v2881_v36, %v2869_v29  ;;  %v4643_v36 = vld [vmem:[#allocation11 + $0x60] sm:$0xff] }
 0x1d6   : > { %v2895_v46 = vadd.f32 %v2894_v37, %v2882_v45  ;;  %3052 = vmatpush.bf16.msra.mxu0 %v4643_v36  ;;  %v4642_v37 = vld [vmem:[#allocation11 + $0x58] sm:$0xff] }
 0x1da   : > { %3053 = vmatpush.bf16.msra.mxu0 %v4642_v37 }
 0x1db   : > { %v2883_v25 = vpop.f32.mrf.mxu2  ;;  %v2896_v39 = vpop.f32.mrf.mxu3 }
 0x1dc   : > { %v4640_v25 = vld [vmem:[#allocation11 + $0x48] sm:$0xff]  ;;  %v4639_v39 = vld [vmem:[#allocation11 + $0x40] sm:$0xff] }
 0x1de   : > { %3054 = vmatpush.bf16.msra.mxu0 %v4641_v38 }
 0x1e2   : > { %3055 = vmatpush.bf16.msra.mxu0 %v4640_v25 }
 0x1e4   : > { %v2907_v43 = vpop.f32.mrf.mxu0  ;;  %v2920_v44 = vpop.f32.mrf.mxu1 }
 0x1e5   : > { %v2908_v47 = vadd.f32 %v2907_v43, %v2895_v46 }
 0x1e6   : > { %3056 = vmatpush.bf16.msra.mxu0 %v4639_v39 }
 0x1e7   : > { %v2921_v51 = vadd.f32 %v2920_v44, %v2908_v47 }
 0x1ec   : > { %v2909_v48 = vpop.f32.mrf.mxu0  ;;  %v2922_v49 = vpop.f32.mrf.mxu1 }
 0x1f2   : > { %v2933_v27 = vpop.f32.mrf.mxu2  ;;  %v2946_v52 = vpop.f32.mrf.mxu3 }
 0x1f3   : > { %v2934_v53 = vadd.f32 %v2933_v27, %v2921_v51  ;;  %v4754_v51 = vld [vmem:[%s5465_s5 + $0x1] ss:$0 sm:$0xff] }
 0x1f5   : > { %v2947_v54 = vadd.f32 %v2946_v52, %v2934_v53  ;;  %v4755_v53 = vld [vmem:[#allocation10 + $0x1] ss:$0 sm:$0xff] }
 0x1f7   : > { %v2950_v35 = vadd.f32 %v2947_v54, %v432_v23  ;;  %v4752_v23 = vld [vmem:[%s5465_s5] ss:$0 sm:$0xff] }
 0x1f9   : > { %2951 = vadd.xlane.f32.xlu0 %v2950_v35 }
 0x1fa   : > { %v2935_v56 = vpop.f32.mrf.mxu2  ;;  %v2948_v40 = vpop.f32.mrf.mxu3 }
 0x22d   : > { %v2247_v58 = vpop.xlane.xlu0 %2246 }
 0x22e   : > { %v2255_v6 = vmul.f32 %v5406_v4, %v2247_v58 }
 0x230   : > { %v2256_v0 = vsub.f32 %v2245_v26, %v2255_v6 }
 0x232   : > { %v2257_v7 = vmul.f32 %v2256_v0, %v2256_v0 }
 0x234   : > { %2258 = vadd.xlane.f32.xlu1 %v2257_v7 }
 0x26c   : > { %v2952_v8 = vpop.xlane.xlu0 %2951 }
 0x26d   : > { %v2953_v55 = vmul.f32 %v2952_v8, %v5406_v4 }
 0x26f   : > { %v5410_v60 = vsub.f32 %v2950_v35, %v2953_v55 }
 0x271   : > { %v2955_v10 = vmul.f32 %v5410_v60, %v5410_v60 }
 0x273   : > { %2956 = vadd.xlane.f32.xlu1 %v2955_v10 }
 0x2a7   : > { %v2259_v50 = vpop.xlane.xlu1 %2258 }
 0x2a8   : > { %v2260_v1 = vmul.f32 %v2259_v50, %v5406_v4 }
 0x2aa   : > { %v2261_v18 = vadd.f32 1e-05, %v2260_v1 }
 0x2ac   : > { %4791 = vrsqrt.f32 %v2261_v18  ;;  %vm2268_vm2 = vweird.f32 %v2261_v18 }
 0x2b2   : > { %v4792_v19 = vpop.eup %4791 }
 0x2b3   : > { %v2263_v20 = vmul.f32 %v4792_v19, %v2261_v18  ;;  %vm2269_vm1 = vweird.f32 %v4792_v19 }
 0x2b4   : > { %vm2270_vm3 = vmor %vm2268_vm2, %vm2269_vm1 }
 0x2b5   : > { %v2264_v9 = vmul.f32 %v4792_v19, %v2263_v20 }
 0x2b7   : > { %v2265_v5 = vmul.f32 0.5, %v2264_v9 }
 0x2b9   : > { %v2266_v21 = vsub.f32 1.5, %v2265_v5 }
 0x2bb   : > { %v2267_v22 = vmul.f32 %v4792_v19, %v2266_v21 }
 0x2bd   : > { %v2271_v24 = vsel %vm2270_vm3, %v4792_v19, %v2267_v22 }
 0x2be   : > { %v2272_v26 = vmul.f32 %v2271_v24, %v2256_v0 }
 0x2c0   : > { %v2277_v30 = vmul.f32 %v4752_v23, %v2272_v26 }
 0x2c2   : > { %v2282_v31 = vadd.f32 %v4753_v28, %v2277_v30 }
 0x2c4   : > { %v2283_v32 = vpack.c.bf16 %v2282_v31, %v2282_v31 }
 0x2c6   : > { %3118 = vmatmul.bf16.vlgmr.msra.gmra.mxu1 %v2283_v32 }
 0x2e6   : > { %v2957_v41 = vpop.xlane.xlu1 %2956 }
 0x2e7   : > { %v2958_v29 = vmul.f32 %v2957_v41, %v5406_v4 }
 0x2e9   : > { %v2959_v43 = vadd.f32 1e-05, %v2958_v29 }
 0x2eb   : > { %4793 = vrsqrt.f32 %v2959_v43  ;;  %vm2966_vm5 = vweird.f32 %v2959_v43 }
 0x2f1   : > { %v4794_v44 = vpop.eup %4793 }
 0x2f2   : > { %v2961_v45 = vmul.f32 %v4794_v44, %v2959_v43  ;;  %vm2967_vm4 = vweird.f32 %v4794_v44 }
 0x2f3   : > { %vm2968_vm6 = vmor %vm2966_vm5, %vm2967_vm4 }
 0x2f4   : > { %v2962_v46 = vmul.f32 %v4794_v44, %v2961_v45 }
 0x2f6   : > { %v2963_v47 = vmul.f32 0.5, %v2962_v46 }
 0x2f8   : > { %v2964_v48 = vsub.f32 1.5, %v2963_v47 }
 0x2fa   : > { %v2965_v49 = vmul.f32 %v4794_v44, %v2964_v48 }
 0x2fc   : > { %v2969_v27 = vsel %vm2968_vm6, %v4794_v44, %v2965_v49 }
 0x2fd   : > { %v2970_v52 = vmul.f32 %v2969_v27, %v5410_v60 }
 0x2ff   : > { %v2976_v54 = vmul.f32 %v4754_v51, %v2970_v52 }
 0x301   : > { %v2982_v35 = vadd.f32 %v4755_v53, %v2976_v54 }
 0x303   : > { %v2983_v56 = vpack.c.bf16 %v2982_v35, %v2982_v35 }
 0x305   : > { %3057 = vmatmul.bf16.vlgmr.msra.gmra.mxu0 %v2983_v56 }
 0x343   : > { %v3119_v40 = vpop.f32.mrf.mxu1 }
 0x34b   : > { %v3121_v42 = vpop.f32.mrf.mxu1 }
 0x382   : > { %v3058_v61 = vpop.f32.mrf.mxu0 }
 0x383   : > { %v3120_v62 = vadd.f32 %v3119_v40, %v3058_v61 }
 0x385   : > { %v3127_v2 = vadd.f32 %v4756_v59, %v3120_v62 }
 0x387   : > { %3128 = vst [vmem:[%s430_s2] sm:$0xff] %v3127_v2 }
 0x388   : > { %5003 = shalt.err (!%p5000_p9)
}
 0x389   : > { %4669 = dma.vmem_to_hbm [thread:$0]  (%p5209_p4), %s3143_s3, 128, %s3145_s6, %s3130_s17  }
 0x38a   : > { %v3060_v3 = vpop.f32.mrf.mxu0 }
 0x38b PF: > { %s3156_s27 = sand.u32 1, %s5042_s30   ;;  %p5485_p10 = scmp.ge.s32.totalorder %s5054_s12, 2 }
 0x38c   : > { %s3157_s28 = scalar_lea.sflag [#allocation4], %s3156_s27 }
 0x38d   : > { %p4692_p13 = pnand %p5485_p10, %p5213_p6 }
 0x38f   : > { %p4693_p11 = pneg %p4692_p13 }
 0x391   : > { %5037 = dma.done.wait (%p4693_p11), %s3157_s28, 128  }
 0x392   : > { %5039 = vsyncadd (%p4693_p11), %s3157_s28, 4294967168  ;;  %p25_p0 = scmp.ge.s32.totalorder %s5183_s20, 4   ;;  %s5486_s30 = smov %s5046_s10 }
 0x393   : > { %s5487_s10 = smov %s5050_s11  ;;  %s5488_s11 = smov %s5194_s24 }
 0x394   : > { %s5489_s12 = smov %s5183_s20  ;;  %27 = sbr.rel (!%p25_p0) target bundleno = 13 (0xd), region = 126 }
 0x399   :  { %3163 = vsyncpa [#allocation3], 1 }
 0x39a   :  { %3165 = vsyncpa [#allocation3 + $0x1], 1 }
 0x39b   :  { %3166 = vsyncpa [#allocation6], 1 }
 0x39c   :  { %3167 = vsyncpa [#allocation9], 1 }
 0x39d   :  { %3168 = vsyncpa [#allocation12], 1 }
 0x39e   :  { %3169 = vsyncpa [#allocation4], 1 }
 0x39f   :  { %3171 = vsyncpa [#allocation4 + $0x1], 1 }

</bundles_post_ra>
